<compile_context>
chip_gen: v6e
topology: v6e:2x2x1
jax: 0.10.0
libtpu: 0.0.40
codegen_flags: <defaults>
</compile_context>

<pallas_src>
import functools

import jax
import jax.numpy as jnp
from jax.experimental import pallas as pl
from jax.experimental.pallas import tpu as pltpu

LANE = 128                                # pad every feature dim to this
VMEM_LIMIT = 48 * 1024 * 1024             # safe on v7x (64 MiB), fine on v5e/v6e
RESIDENT_BYTES_BUDGET = 24 * 1024 * 1024  # cap for a fully VMEM-resident operand


def _round_up(x, m):
    return (x + m - 1) // m * m


def _pick_tiles(n_pad):
    """Row tile TM and contraction tile TK for the propagation kernels."""
    # TM: prefer 512-row blocks, but keep >= 2 row blocks when possible so the
    # 'parallel' row axis can actually shard across both v7x TensorCores.
    if n_pad % 512 == 0 and n_pad // 512 >= 2:
        tm = 512
    else:
        tm = 256
    # TK: largest of {2048,1024,512,256} dividing n_pad (2 MiB bf16 A tile max).
    tk = 256
    for cand in (2048, 1024, 512, 256):
        if n_pad % cand == 0:
            tk = cand
            break
    return tm, tk


# ---------------------------------------------------------------------------
# Kernel 1 (layer 1, fully fused):
#   acc_i += A[i,k] @ (X[k] @ W1)            per contraction step
#   o_i    = relu(acc_i + b1) @ W2           finalize epilogue
# ---------------------------------------------------------------------------
def _gcn_layer1_kernel(a_ref, x_ref, w1_ref, b1_ref, w2_ref, o_ref, acc_ref,
                       *, tk, x_resident):
    k = pl.program_id(1)

    @pl.when(k == 0)
    def _():
        acc_ref[...] = jnp.zeros_like(acc_ref)

    if x_resident:
        start = pl.multiple_of(k * tk, tk)
        x_k = x_ref[pl.ds(start, tk), :]
    else:
        x_k = x_ref[...]

    # Tiny feature transform fused into the contraction step: the extra MXU
    # work is free in this memory-bound regime and saves an HBM round trip.
    xw1 = jnp.dot(x_k, w1_ref[...], preferred_element_type=jnp.float32)
    acc_ref[...] += jnp.dot(a_ref[...], xw1.astype(jnp.bfloat16),
                            preferred_element_type=jnp.float32)

    @pl.when(k == pl.num_programs(1) - 1)
    def _():
        h = jnp.maximum(acc_ref[...] + b1_ref[...], 0.0)
        # Fuse H @ W2 into the epilogue: this output IS layer 2's operand.
        o_ref[...] = jnp.dot(h.astype(jnp.bfloat16), w2_ref[...],
                             preferred_element_type=jnp.float32
                             ).astype(o_ref.dtype)


def gcn_layer1(a_pad, x_pad, w1, b1, w2, *, tm, tk, out_dtype=jnp.bfloat16):
    n = a_pad.shape[0]
    cin = x_pad.shape[1]
    hid = w1.shape[1]
    cout = w2.shape[1]

    x_resident = n * cin * x_pad.dtype.itemsize <= RESIDENT_BYTES_BUDGET
    if x_resident:
        x_spec = pl.BlockSpec((n, cin), lambda i, k: (0, 0))   # single DMA, resident
        x_bytes = n * cin * x_pad.dtype.itemsize
    else:
        x_spec = pl.BlockSpec((tk, cin), lambda i, k: (k, 0))  # streamed per (i,k)
        x_bytes = (n // tm) * n * cin * x_pad.dtype.itemsize

    kernel = functools.partial(_gcn_layer1_kernel, tk=tk, x_resident=x_resident)
    flops = (2 * n * n * hid                       # A_hat contraction
             + 2 * (n // tm) * n * cin * hid       # fused X@W1 recompute
             + 2 * n * hid * cout)                 # fused epilogue H@W2
    bytes_accessed = (n * n * a_pad.dtype.itemsize + x_bytes
                      + cin * hid * 2 + hid * 4 + hid * cout * 2
                      + n * cout * jnp.dtype(out_dtype).itemsize)

    # TODO(synk): on v6e, pipeline_mode=pl.Buffered(3) on the A spec (with a
    # higher vmem_limit) gives a few extra % once tiles are >= 1 MiB.
    return pl.pallas_call(
        kernel,
        out_shape=jax.ShapeDtypeStruct((n, cout), out_dtype),
        grid=(n // tm, n // tk),
        in_specs=[
            pl.BlockSpec((tm, tk), lambda i, k: (i, k)),     # A_hat tile (streamed)
            x_spec,                                          # X (resident or streamed)
            pl.BlockSpec((cin, hid), lambda i, k: (0, 0)),   # W1 (tiny, resident)
            pl.BlockSpec((1, hid), lambda i, k: (0, 0)),     # b1
            pl.BlockSpec((hid, cout), lambda i, k: (0, 0)),  # W2 (tiny, resident)
        ],
        out_specs=pl.BlockSpec((tm, cout), lambda i, k: (i, 0)),
        scratch_shapes=[pltpu.VMEM((tm, hid), jnp.float32)],
        compiler_params=pltpu.CompilerParams(
            dimension_semantics=("parallel", "arbitrary"),
            vmem_limit_bytes=VMEM_LIMIT,
        ),
        cost_estimate=pl.CostEstimate(
            flops=flops, transcendentals=0, bytes_accessed=bytes_accessed),
    )(a_pad, x_pad, w1, b1, w2)


# ---------------------------------------------------------------------------
# Kernel 2 (layer 2): out_i = A[i,:] @ M2 + b2
# ---------------------------------------------------------------------------
def _gcn_layer2_kernel(a_ref, m_ref, b2_ref, o_ref, acc_ref, *, tk, m_resident):
    k = pl.program_id(1)

    @pl.when(k == 0)
    def _():
        acc_ref[...] = jnp.zeros_like(acc_ref)

    if m_resident:
        start = pl.multiple_of(k * tk, tk)
        m_k = m_ref[pl.ds(start, tk), :]
    else:
        m_k = m_ref[...]

    acc_ref[...] += jnp.dot(a_ref[...], m_k, preferred_element_type=jnp.float32)

    @pl.when(k == pl.num_programs(1) - 1)
    def _():
        o_ref[...] = (acc_ref[...] + b2_ref[...]).astype(o_ref.dtype)


def gcn_layer2(a_pad, m, b2, *, tm, tk, out_dtype=jnp.float32):
    n = a_pad.shape[0]
    cout = m.shape[1]

    m_resident = n * cout * m.dtype.itemsize <= RESIDENT_BYTES_BUDGET
    if m_resident:
        m_spec = pl.BlockSpec((n, cout), lambda i, k: (0, 0))   # single DMA, resident
        m_bytes = n * cout * m.dtype.itemsize
    else:
        m_spec = pl.BlockSpec((tk, cout), lambda i, k: (k, 0))  # streamed per (i,k)
        m_bytes = (n // tm) * n * cout * m.dtype.itemsize

    kernel = functools.partial(_gcn_layer2_kernel, tk=tk, m_resident=m_resident)
    bytes_accessed = (n * n * a_pad.dtype.itemsize + m_bytes + cout * 4
                      + n * cout * jnp.dtype(out_dtype).itemsize)

    return pl.pallas_call(
        kernel,
        out_shape=jax.ShapeDtypeStruct((n, cout), out_dtype),
        grid=(n // tm, n // tk),
        in_specs=[
            pl.BlockSpec((tm, tk), lambda i, k: (i, k)),    # A_hat tile (streamed)
            m_spec,                                         # M2 (resident or streamed)
            pl.BlockSpec((1, cout), lambda i, k: (0, 0)),   # b2
        ],
        out_specs=pl.BlockSpec((tm, cout), lambda i, k: (i, 0)),
        scratch_shapes=[pltpu.VMEM((tm, cout), jnp.float32)],
        compiler_params=pltpu.CompilerParams(
            dimension_semantics=("parallel", "arbitrary"),
            vmem_limit_bytes=VMEM_LIMIT,
        ),
        cost_estimate=pl.CostEstimate(
            flops=2 * n * n * cout, transcendentals=0,
            bytes_accessed=bytes_accessed),
    )(a_pad, m, b2)


# ---------------------------------------------------------------------------
# Glue: dense symmetrically-normalized adjacency (plain JAX scatter)
# ---------------------------------------------------------------------------
def normalized_adjacency(edge_index, num_nodes):
    """Dense D^{-1/2}(A+I)D^{-1/2}; A[dst, src] = 1 for each edge src->dst."""
    src, dst = edge_index[0], edge_index[1]
    adj = jnp.zeros((num_nodes, num_nodes), jnp.float32)
    adj = adj.at[dst, src].set(1.0)                      # duplicates collapse to 1
    adj = adj + jnp.eye(num_nodes, dtype=jnp.float32)    # add self loops
    deg = jnp.sum(adj, axis=1)
    dinv_sqrt = jnp.where(deg > 0, 1.0 / jnp.sqrt(deg), 0.0)
    return adj * dinv_sqrt[:, None] * dinv_sqrt[None, :]


# ---------------------------------------------------------------------------
# GCNEncoder forward (two pallas_calls total)
# ---------------------------------------------------------------------------
def gcn_encoder_pallas(x, edge_index, w1, b1, w2, b2):
    num_nodes, cin = x.shape
    hid = w1.shape[1]
    cout = w2.shape[1]

    n_pad = _round_up(num_nodes, 256)
    tm, tk = _pick_tiles(n_pad)
    cin_p = _round_up(cin, LANE)
    hid_p = _round_up(hid, LANE)
    cout_p = _round_up(cout, LANE)
    pad_n = n_pad - num_nodes

    # Dense normalized adjacency, padded + cast in one shot (no extra f32 copy).
    # TODO(synk): cache A_pad across forward calls (it depends only on
    # edge_index), and for large sparse graphs skip all-zero A blocks via
    # PrefetchScalarGridSpec with per-row-block nonzero-column lists.
    a_hat = normalized_adjacency(edge_index, num_nodes)
    a_pad = jnp.pad(a_hat.astype(jnp.bfloat16), ((0, pad_n), (0, pad_n)))

    x_pad = jnp.pad(x.astype(jnp.bfloat16), ((0, pad_n), (0, cin_p - cin)))
    w1_pad = jnp.pad(w1.astype(jnp.bfloat16),
                     ((0, cin_p - cin), (0, hid_p - hid)))
    b1_pad = jnp.pad(b1.reshape(1, -1).astype(jnp.float32),
                     ((0, 0), (0, hid_p - hid)))
    w2_pad = jnp.pad(w2.astype(jnp.bfloat16),
                     ((0, hid_p - hid), (0, cout_p - cout)))
    b2_pad = jnp.pad(b2.reshape(1, -1).astype(jnp.float32),
                     ((0, 0), (0, cout_p - cout)))

    # Layer 1 (fused): M2 = relu(A_hat @ (X @ W1) + b1) @ W2
    m2 = gcn_layer1(a_pad, x_pad, w1_pad, b1_pad, w2_pad, tm=tm, tk=tk,
                    out_dtype=jnp.bfloat16)
    # Layer 2: out = A_hat @ M2 + b2
    out = gcn_layer2(a_pad, m2, b2_pad, tm=tm, tk=tk, out_dtype=jnp.float32)

    return out[:num_nodes, :cout]


def glorot(key, shape):
    fan_in, fan_out = shape
    limit = jnp.sqrt(6.0 / (fan_in + fan_out))
    return jax.random.uniform(key, shape, jnp.float32, -limit, limit)


if __name__ == "__main__":
    key = jax.random.PRNGKey(0)
    k_x, k_e, k_w1, k_w2, k_b1, k_b2 = jax.random.split(key, 6)

    num_nodes = 512
    in_channels = 16
    out_channels = 8
    hidden = 2 * out_channels
    num_edges = 2048

    x = jax.random.normal(k_x, (num_nodes, in_channels), jnp.float32)
    edge_index = jax.random.randint(k_e, (2, num_edges), 0, num_nodes)

    w1 = glorot(k_w1, (in_channels, hidden))
    b1 = 0.1 * jax.random.normal(k_b1, (hidden,), jnp.float32)
    w2 = glorot(k_w2, (hidden, out_channels))
    b2 = 0.1 * jax.random.normal(k_b2, (out_channels,), jnp.float32)

    out = gcn_encoder_pallas(x, edge_index, w1, b1, w2, b2)
    jax.block_until_ready(out)

    # --- reference matching the kernel's bf16-operand / f32-accumulate path ---
    a_hat = normalized_adjacency(edge_index, num_nodes)
    a_bf = a_hat.astype(jnp.bfloat16)
    xw1_r = jnp.dot(x.astype(jnp.bfloat16), w1.astype(jnp.bfloat16),
                    preferred_element_type=jnp.float32).astype(jnp.bfloat16)
    h_r = jnp.maximum(
        jnp.dot(a_bf, xw1_r, preferred_element_type=jnp.float32) + b1, 0.0
    ).astype(jnp.bfloat16)
    hw2_r = jnp.dot(h_r, w2.astype(jnp.bfloat16),
                    preferred_element_type=jnp.float32).astype(jnp.bfloat16)
    ref_bf = jnp.dot(a_bf, hw2_r, preferred_element_type=jnp.float32) + b2
    assert jnp.allclose(out, ref_bf, atol=2e-2, rtol=2e-2), "mismatch vs bf16 ref"

    # --- loose sanity check against the full-f32 reference ---
    h_f = jax.nn.relu(a_hat @ (x @ w1) + b1)
    ref_f32 = a_hat @ (h_f @ w2) + b2
    assert jnp.allclose(out, ref_f32, atol=0.25, rtol=0.25), "mismatch vs f32 ref"

    print("KERNEL_OK")
</pallas_src>

<mosaic_0001>
module attributes {stable_mosaic.version = 11 : i64} {
  func.func @_gcn_layer1_kernel(%arg0: i32, %arg1: i32, %arg2: memref<256x512xbf16, #tpu.memory_space<vmem>>, %arg3: memref<512x128xbf16, #tpu.memory_space<vmem>>, %arg4: memref<128x128xbf16, #tpu.memory_space<vmem>>, %arg5: memref<1x128xf32, #tpu.memory_space<vmem>>, %arg6: memref<128x128xbf16, #tpu.memory_space<vmem>>, %arg7: memref<256x128xbf16, #tpu.memory_space<vmem>>, %arg8: memref<256x128xf32, #tpu.memory_space<vmem>>) attributes {dimension_semantics = [#tpu.dimension_semantics<parallel>, #tpu.dimension_semantics<arbitrary>], iteration_bounds = array<i64: 2, 1>, scalar_prefetch = 0 : i64, scratch_operands = 1 : i64, tpu.core_type = #tpu.core_type<tc>, window_params = [{transform_indices = @transform_0, window_bounds = array<i64: 256, 512>}, {pipeline_mode = #tpu.pipeline_mode<synchronous>, transform_indices = @transform_1, window_bounds = array<i64: 512, 128>}, {pipeline_mode = #tpu.pipeline_mode<synchronous>, transform_indices = @transform_2, window_bounds = array<i64: 128, 128>}, {pipeline_mode = #tpu.pipeline_mode<synchronous>, transform_indices = @transform_3, window_bounds = array<i64: 1, 128>}, {pipeline_mode = #tpu.pipeline_mode<synchronous>, transform_indices = @transform_4, window_bounds = array<i64: 128, 128>}, {transform_indices = @transform_5, window_bounds = array<i64: 256, 128>}]} {
    %c0_i32 = arith.constant 0 : i32
    %0 = arith.cmpi eq, %arg1, %c0_i32 : i32
    %1 = arith.extui %0 : i1 to i32
    %c0_i32_0 = arith.constant 0 : i32
    %2 = arith.cmpi ne, %1, %c0_i32_0 : i32
    scf.if %2 {
      %cst_12 = arith.constant 0.000000e+00 : f32
      %18 = vector.broadcast %cst_12 : f32 to vector<256x128xf32>
      %c0_13 = arith.constant 0 : index
      %c0_14 = arith.constant 0 : index
      %19 = vector.load %arg8[%c0_13, %c0_14] : memref<256x128xf32, #tpu.memory_space<vmem>>, vector<256x128xf32>
      tpu.vector_store %arg8[%c0_13, %c0_14], %18 {strides = array<i32>} : memref<256x128xf32, #tpu.memory_space<vmem>>, vector<256x128xf32>,
    } else {
    }
    %c512_i32 = arith.constant 512 : i32
    %3 = arith.muli %arg1, %c512_i32 : i32
    %4 = tpu.assume_multiple %3, 512 : i32
    %5 = arith.index_cast %4 : i32 to index
    %c0 = arith.constant 0 : index
    %6 = vector.load %arg3[%5, %c0] : memref<512x128xbf16, #tpu.memory_space<vmem>>, vector<512x128xbf16>
    %c0_1 = arith.constant 0 : index
    %c0_2 = arith.constant 0 : index
    %7 = vector.load %arg4[%c0_1, %c0_2] : memref<128x128xbf16, #tpu.memory_space<vmem>>, vector<128x128xbf16>
    %cst = arith.constant dense<0.000000e+00> : vector<512x128xf32>
    %8 = tpu.matmul %6, %7, %cst {dimension_numbers = #tpu.dot_dimension_numbers<[1], [0], [0], [1], [0, 0, 1, 1], [], []>} : vector<512x128xbf16>, vector<128x128xbf16>, vector<512x128xf32> -> vector<512x128xf32>
    %c0_3 = arith.constant 0 : index
    %c0_4 = arith.constant 0 : index
    %9 = vector.load %arg8[%c0_3, %c0_4] : memref<256x128xf32, #tpu.memory_space<vmem>>, vector<256x128xf32>
    %c0_5 = arith.constant 0 : index
    %c0_6 = arith.constant 0 : index
    %10 = vector.load %arg2[%c0_5, %c0_6] : memref<256x512xbf16, #tpu.memory_space<vmem>>, vector<256x512xbf16>
    %11 = arith.truncf %8 : vector<512x128xf32> to vector<512x128xbf16>
    %cst_7 = arith.constant dense<0.000000e+00> : vector<256x128xf32>
    %12 = tpu.matmul %10, %11, %cst_7 {dimension_numbers = #tpu.dot_dimension_numbers<[1], [0], [0], [1], [0, 0, 1, 1], [], []>} : vector<256x512xbf16>, vector<512x128xbf16>, vector<256x128xf32> -> vector<256x128xf32>
    %13 = arith.addf %9, %12 : vector<256x128xf32>
    %c0_8 = arith.constant 0 : index
    %c0_9 = arith.constant 0 : index
    %14 = vector.load %arg8[%c0_8, %c0_9] : memref<256x128xf32, #tpu.memory_space<vmem>>, vector<256x128xf32>
    tpu.vector_store %arg8[%c0_8, %c0_9], %13 {strides = array<i32>} : memref<256x128xf32, #tpu.memory_space<vmem>>, vector<256x128xf32>,
    %c0_i32_10 = arith.constant 0 : i32
    %15 = arith.cmpi eq, %arg1, %c0_i32_10 : i32
    %16 = arith.extui %15 : i1 to i32
    %c0_i32_11 = arith.constant 0 : i32
    %17 = arith.cmpi ne, %16, %c0_i32_11 : i32
    scf.if %17 {
      %c0_12 = arith.constant 0 : index
      %c0_13 = arith.constant 0 : index
      %18 = vector.load %arg8[%c0_12, %c0_13] : memref<256x128xf32, #tpu.memory_space<vmem>>, vector<256x128xf32>
      %c0_14 = arith.constant 0 : index
      %c0_15 = arith.constant 0 : index
      %19 = vector.load %arg5[%c0_14, %c0_15] : memref<1x128xf32, #tpu.memory_space<vmem>>, vector<1x128xf32>
      %20 = vector.broadcast %19 : vector<1x128xf32> to vector<256x128xf32>
      %21 = arith.addf %18, %20 : vector<256x128xf32>
      %cst_16 = arith.constant 0.000000e+00 : f32
      %22 = vector.broadcast %cst_16 : f32 to vector<256x128xf32>
      %23 = arith.maximumf %21, %22 : vector<256x128xf32>
      %24 = arith.truncf %23 : vector<256x128xf32> to vector<256x128xbf16>
      %c0_17 = arith.constant 0 : index
      %c0_18 = arith.constant 0 : index
      %25 = vector.load %arg6[%c0_17, %c0_18] : memref<128x128xbf16, #tpu.memory_space<vmem>>, vector<128x128xbf16>
      %cst_19 = arith.constant dense<0.000000e+00> : vector<256x128xf32>
      %26 = tpu.matmul %24, %25, %cst_19 {dimension_numbers = #tpu.dot_dimension_numbers<[1], [0], [0], [1], [0, 0, 1, 1], [], []>} : vector<256x128xbf16>, vector<128x128xbf16>, vector<256x128xf32> -> vector<256x128xf32>
      %27 = arith.truncf %26 : vector<256x128xf32> to vector<256x128xbf16>
      %c0_20 = arith.constant 0 : index
      %c0_21 = arith.constant 0 : index
      %28 = vector.load %arg7[%c0_20, %c0_21] : memref<256x128xbf16, #tpu.memory_space<vmem>>, vector<256x128xbf16>
      tpu.vector_store %arg7[%c0_20, %c0_21], %27 {strides = array<i32>} : memref<256x128xbf16, #tpu.memory_space<vmem>>, vector<256x128xbf16>,
    } else {
    }
    return
  }
  func.func @transform_0(%arg0: i32, %arg1: i32) -> (i32, i32) {
    %c0_i32 = arith.constant 0 : i32
    return %arg0, %arg1 : i32, i32
  }
  func.func @transform_1(%arg0: i32, %arg1: i32) -> (i32, i32) {
    %c0_i32 = arith.constant 0 : i32
    %c0_i32_0 = arith.constant 0 : i32
    %c0_i32_1 = arith.constant 0 : i32
    return %c0_i32, %c0_i32_0 : i32, i32
  }
  func.func @transform_2(%arg0: i32, %arg1: i32) -> (i32, i32) {
    %c0_i32 = arith.constant 0 : i32
    %c0_i32_0 = arith.constant 0 : i32
    %c0_i32_1 = arith.constant 0 : i32
    return %c0_i32, %c0_i32_0 : i32, i32
  }
  func.func @transform_3(%arg0: i32, %arg1: i32) -> (i32, i32) {
    %c0_i32 = arith.constant 0 : i32
    %c0_i32_0 = arith.constant 0 : i32
    %c0_i32_1 = arith.constant 0 : i32
    return %c0_i32, %c0_i32_0 : i32, i32
  }
  func.func @transform_4(%arg0: i32, %arg1: i32) -> (i32, i32) {
    %c0_i32 = arith.constant 0 : i32
    %c0_i32_0 = arith.constant 0 : i32
    %c0_i32_1 = arith.constant 0 : i32
    return %c0_i32, %c0_i32_0 : i32, i32
  }
  func.func @transform_5(%arg0: i32, %arg1: i32) -> (i32, i32) {
    %c0_i32 = arith.constant 0 : i32
    %c0_i32_0 = arith.constant 0 : i32
    return %arg0, %c0_i32 : i32, i32
  }
}

</mosaic_0001>

<bundles_post_ra>
// kernel: tpu_custom_call.1
= control target key start
LH: loop header
LB: loop body
LE: loop exit
PB: predicated region body
PF: predicated region fallthrough
CT: control target
= control target key end

     0   :  { %s4182_s0 = inlined_call_operand.hbm [shape: bf16[512,512], index: 0, kind: input, shape index: {}]   ;;  %s4183_s1 = inlined_call_operand.hbm [shape: bf16[512,128], index: 1, kind: input, shape index: {}]   ;;  %s4184_s2 = inlined_call_operand.hbm [shape: bf16[128,128], index: 2, kind: input, shape index: {}]   ;;  %s4185_s3 = inlined_call_operand.vmem [shape: f32[1,128], index: 3, kind: input, shape index: {}]   ;;  %s4186_s4 = inlined_call_operand.hbm [shape: bf16[128,128], index: 4, kind: input, shape index: {}]   ;;  %s4187_s5 = inlined_call_operand.hbm [shape: bf16[512,128], index: 5, kind: output, shape index: {}]  }
   0x1   :  { %4192 = sst [smem:[#allocation16_spill]] %s4183_s1 }
   0x2   :  { %10 = vsyncpa [#allocation4], 0 }
   0x3   :  { %12 = vsyncpa [#allocation4 + $0x1], 0 }
   0x4   :  { %13 = vsyncpa [#allocation7], 0 }
   0x5   :  { %14 = vsyncpa [#allocation10], 0 }
   0x6   :  { %15 = vsyncpa [#allocation5], 0 }
   0x7   :  { %17 = vsyncpa [#allocation5 + $0x1], 0  ;;  %s3637_s18 = smov 0   ;;  %s3639_s19 = smov 0  }
   0x8   :  { %s3641_s20 = smov 0   ;;  %s3643_s21 = smov 0  }
   0x9   :  { %s3645_s22 = smov 0   ;;  %s3647_s23 = smov 0  }
   0xa LB: > { %s2428_s24 = sadd.s32 4294967295, %s3594_s23   ;;  %s2429_s25 = sadd.s32 4294967294, %s3594_s23   ;;  %s3594_s23 = sphi %s3647_s23, %s23_s23   ;;  %s3590_s22 = sphi %s3645_s22, %s4212_s22   ;;  %s3586_s21 = sphi %s3643_s21, %s4211_s21   ;;  %s3582_s20 = sphi %s3641_s20, %s4210_s20   ;;  %s3578_s19 = sphi %s3639_s19, %s4209_s19   ;;  %s3574_s18 = sphi %s3637_s18, %s4208_s18  }
   0xb   : > { %p57_p0 = scmp.ne.s32.totalorder %s3578_s19, %s3574_s18  ;;  %p3671_p1 = scmp.eq.s32.totalorder %s2428_s24, 0 }
   0xc   : > { %p3675_p2 = scmp.eq.s32.totalorder %s2428_s24, 1  ;;  %p171_p3 = scmp.eq.s32.totalorder %s2429_s25, 1 }
   0xd   : > { %s4193_s26 = scalar_select %p3671_p1, 1, 0 }
   0xe   : > { %p3681_p4 = por %p3671_p1, %p57_p0  ;;  %p2430_p5 = scmp.ge.s32.totalorder %s3594_s23, 1 }
   0xf   : > { %p3686_p6 = por %p171_p3, %p57_p0  ;;  %p178_p7 = scmp.lt.s32.totalorder %s3594_s23, 3 }
  0x10   : > { %s4195_s28 = scalar_select %p3681_p4, 1, 0 }
  0x11   : > { %s4196_s29 = scalar_select %p3686_p6, 1, 0 }
  0x12   : > { %p3691_p8 = pnand %p2430_p5, %p178_p7  ;;  %s3596_s6 = smov [#allocation6]  }
  0x13   : > { %s190_s7 = sshll.u32 %s3596_s6, 4  ;;  %s3597_s9 = smov [#allocation8]   ;;  %s191_s7 = int_to_ptr.vmem [resolvable:$true] %s190_s7 }
  0x14   : > { %s4197_s30 = scalar_select %p3691_p8, 1, 0 }
  0x15   : > { %p3173_p9 = pneg %p3691_p8  ;;  %s203_s10 = sshll.u32 %s3597_s9, 4  ;;  %s204_s10 = int_to_ptr.vmem [resolvable:$true] %s203_s10 }
  0x16   : > { %s3598_s11 = smov [#allocation9]   ;;  %s3411_s13 = scalar_lea.vmem %s191_s7, 4096 }
  0x17   : > { %p3700_p11 = pnand %p3173_p9, %p3671_p1  ;;  %s219_s12 = sshll.u32 %s3598_s11, 4  ;;  %s220_s12 = int_to_ptr.vmem [resolvable:$true] %s219_s12 }
  0x18   : > { %p3412_p13 = scmp.ne.s32.totalorder %s191_s7, %s3411_s13  ;;  %p3419_p5 = scmp.lt.s32.totalorder %s191_s7, %s191_s7 }
  0x19   : > { %p3402_p12 = pneg %p3700_p11  ;;  %p3420_p7 = scmp.lt.s32.totalorder %s3411_s13, %s3411_s13 }
  0x1b   : > { %p3414_p0 = pnand %p3412_p13, %p3402_p12  ;;  %p3421_p9 = por %p3420_p7, %p3419_p5 }
  0x1d   : > { %p3415_p3 = pneg %p3414_p0 }
  0x1f   : > { %p3422_p10 = pnand %p3421_p9, %p3415_p3 }
  0x21   : > { %3425 = shalt.err (!%p3422_p10)
}
  0x22   : > { %s3599_s14 = smov 64   ;;  %s3600_s15 = smov 4  }
  0x23   : > { %s4199_s1 = sld [smem:[#allocation16_spill]]  ;;  %s3437_s24 = scalar_lea.vmem %s204_s10, 1024 }
  0x24   : > { %p3438_p6 = scmp.ne.s32.totalorder %s204_s10, %s3437_s24  ;;  %p3445_p1 = scmp.lt.s32.totalorder %s204_s10, %s204_s10 }
  0x25   : > { %p3446_p4 = scmp.lt.s32.totalorder %s3437_s24, %s3437_s24 }
  0x26   : > { %p3440_p13 = pnand %p3438_p6, %p3402_p12 }
  0x27   : > { %p3447_p5 = por %p3446_p4, %p3445_p1 }
  0x28   : > { %p3441_p0 = pneg %p3440_p13 }
  0x29   : > { %3176 = dma.hbm_to_vmem [thread:$0]  (!%p3700_p11), %s4199_s1, 4096, %s191_s7, [#allocation7], %s3599_s14, %s3599_s14, %s3600_s15  }
  0x2a   : > { %p3448_p3 = pnand %p3447_p5, %p3441_p0 }
  0x2c   : > { %3451 = shalt.err (!%p3448_p3)
}
  0x2d   : > { %3179 = dma.hbm_to_vmem [thread:$0]  (!%p3700_p11), %s4184_s2, 1024, %s204_s10, [#allocation7], %s3599_s14, %s3599_s14, %s3600_s15  }
  0x2e   : > { %s3463_s7 = scalar_lea.vmem %s220_s12, 1024  ;;  %p3471_p9 = scmp.lt.s32.totalorder %s220_s12, %s220_s12 }
  0x2f   : > { %p3464_p10 = scmp.ne.s32.totalorder %s220_s12, %s3463_s7  ;;  %p3472_p13 = scmp.lt.s32.totalorder %s3463_s7, %s3463_s7 }
  0x31   : > { %p3466_p7 = pnand %p3464_p10, %p3402_p12  ;;  %p3473_p8 = por %p3472_p13, %p3471_p9 }
  0x33   : > { %p3467_p6 = pneg %p3466_p7 }
  0x35   : > { %p3474_p1 = pnand %p3473_p8, %p3467_p6 }
  0x37   : > { %3477 = shalt.err (!%p3474_p1)
}
  0x38   : > { %3182 = dma.hbm_to_vmem [thread:$0]  (!%p3700_p11), %s4186_s4, 1024, %s220_s12, [#allocation10], %s3599_s14, %s3599_s14, %s3600_s15  }
  0x39   : > { %s44_s10 = sadd.s32 1, %s3582_s20  ;;  %s35_s13 = sadd.s32 1, %s3590_s22 }
  0x3a   : > { %p51_p4 = scmp.ne.s32.totalorder %s3582_s20, %s3578_s19  ;;  %p37_p8 = scmp.ge.s32.totalorder %s35_s13, 2 }
  0x3b   : > { %p52_p12 = scmp.eq.s32.totalorder %s3594_s23, 0  ;;  %p3194_p5 = scmp.lt.s32.totalorder %s3594_s23, 2 }
  0x3c   : > { %p3737_p0 = por %p3675_p2, %p51_p4  ;;  %s4214_s13 = smov (%p37_p8, %s35_s13), 0 }
  0x3d   : > { %p53_p3 = por %p52_p12, %p51_p4  ;;  %s233_s16 = sand.u32 1, %s3582_s20  }
  0x3e   : > { %s39_s17 = ssub.s32 %s3590_s22, %s4214_s13  ;;  %s2435_s12 = sshll.u32 %s233_s16, 9 }
  0x3f   : > { %p42_p10 = scmp.eq.s32.totalorder %s39_s17, 0  ;;  %s2596_s14 = sshll.u32 %s3590_s22, 13 }
  0x40   : > { %s246_s27 = scalar_lea.hbm %s4182_s0, %s2596_s14  ;;  %s237_s6 = scalar_lea.vmem [#allocation3], %s2435_s12 }
  0x41   : > { %s3749_s15 = scalar_select %p42_p10, %s3582_s20, %s44_s10  }
  0x42   : > { %s247_s7 = sshll.u32 %s237_s6, 4  ;;  %p3756_p2 = pnand %p3194_p5, %p53_p3  ;;  %s248_s7 = int_to_ptr.vmem [resolvable:$true] %s247_s7 }
  0x43   : > { %s234_s11 = scalar_lea.sflag [#allocation4], %s233_s16  ;;  %s3491_s17 = scalar_lea.vmem %s248_s7, 8192 }
  0x44   : > { %p3480_p11 = pneg %p3756_p2  ;;  %p3492_p7 = scmp.ne.s32.totalorder %s248_s7, %s3491_s17 }
  0x45   : > { %s3601_s10 = smov [#allocation3]  }
  0x46   : > { %p3494_p6 = pnand %p3492_p7, %p3480_p11  ;;  %s3496_s1 = sshll.u32 %s3601_s10, 4  ;;  %s3497_s1 = int_to_ptr.vmem [resolvable:$false] %s3496_s1 }
  0x47   : > { %s3498_s14 = scalar_lea.vmem %s3497_s1, 16384  ;;  %p3499_p13 = scmp.lt.s32.totalorder %s248_s7, %s3497_s1 }
  0x48   : > { %p3495_p9 = pneg %p3494_p6  ;;  %p3500_p1 = scmp.lt.s32.totalorder %s3498_s14, %s3491_s17 }
  0x4a   : > { %p3501_p4 = por %p3500_p1, %p3499_p13 }
  0x4c   : > { %p3502_p8 = pnand %p3501_p4, %p3495_p9 }
  0x4e   : > { %3505 = shalt.err (!%p3502_p8)
}
  0x4f   : > { %s3602_s12 = smov 256   ;;  %s3603_s24 = smov 16  }
  0x50   : > { %3186 = dma.hbm_to_vmem [thread:$0]  (!%p3756_p2), %s246_s27, 8192, %s248_s7, %s234_s11, %s3602_s12, %s3602_s12, %s3603_s24  }
  0x51   : > { %p4202_p12 = scmp.ne.s32.totalorder %s4197_s30, 0 }
  0x52   : > { %s3767_s16 = sand.u32 (!%p4202_p12), 1, %s3578_s19   ;;  %p4203_p5 = scmp.ne.s32.totalorder (!%p4202_p12), %s4195_s28, 0 }
  0x53   : > { %259 = sbr.rel (%p4202_p12) target bundleno = 989 (0x3dd), region = 40  ;;  %s2440_s25 = sshll.u32 (!%p4202_p12), %s3767_s16, 9 }
  0x54   : > { %s262_s1 = scalar_lea.sflag (!%p4202_p12), [#allocation4], %s3767_s16  ;;  %s3771_s6 = scalar_lea.vmem (!%p4202_p12), [#allocation3], %s2440_s25 }
  0x58   : > { %3557 = dma.done.wait (%p4203_p5), %s262_s1, 8192  }
  0x59   : > { %3559 = vsyncadd (%p4203_p5), %s262_s1, 4294959104  ;;  %p4204_p3 = scmp.ne.s32.totalorder %s4193_s26, 0 }
  0x5b   : > { %3561 = dma.done.wait (%p4204_p3), [#allocation7], 5120  }
  0x5c   : > { %3563 = vsyncadd (%p4204_p3), [#allocation7], 4294962176 }
  0x5d   : > { %3565 = dma.done.wait (%p4204_p3), [#allocation10], 1024  }
  0x5e   : > { %3567 = vsyncadd (%p4204_p3), [#allocation10], 4294966272  ;;  %v3256_v0 = vld [vmem:[#allocation8 + $0x38] sm:$0xff]   ;;  %v3257_v1 = vld [vmem:[#allocation8 + $0x30] sm:$0xff]   ;;  %s2444_s30 = sshll.u32 %s3767_s16, 7  ;;  %s2629_s7 = sshll.u32 %s3586_s21, 11 }
  0x5f   : > { %3013 = vmatprep.subr.bf16.mxu0 %v3256_v0  ;;  %3141 = vmatprep.subr.bf16.mxu1 %v3256_v0  ;;  %v3258_v2 = vld [vmem:[#allocation8 + $0x28] sm:$0xff]   ;;  %v3259_v3 = vld [vmem:[#allocation8 + $0x20] sm:$0xff]   ;;  %v3260_v5 = vld [vmem:[#allocation8 + $0x18] sm:$0xff]   ;;  %s4109_s27 = scalar_lea.vmem [#allocation11], %s2444_s30  ;;  %s4130_s10 = scalar_lea.hbm %s4187_s5, %s2629_s7 }
  0x60   : > { %3014 = vmatpush3.bf16.msra.mxu0 %v3256_v0  ;;  %3149 = vmatpush3.bf16.msra.mxu1 %v3256_v0  ;;  %v3264_v4 = vld [vmem:[#allocation6] sm:$0xff]   ;;  %v3261_v6 = vld [vmem:[#allocation8 + $0x10] sm:$0xff]   ;;  %v3262_v7 = vld [vmem:[#allocation8 + $0x8] sm:$0xff]   ;;  %s2313_s9 = sshll.u32 %s4109_s27, 4  ;;  %s2300_s14 = scalar_lea.sflag [#allocation5], %s3767_s16  ;;  %s4132_s9 = int_to_ptr.vmem [resolvable:$true] %s2313_s9 }
  0x61   : > { %3015 = vmatprep.subr.bf16.mxu0 %v3257_v1  ;;  %3142 = vmatprep.subr.bf16.mxu1 %v3257_v1  ;;  %v3263_v8 = vld [vmem:[#allocation8] sm:$0xff]   ;;  %v3265_v10 = vld [vmem:[#allocation6 + $0x8] sm:$0xff]   ;;  %v3266_v11 = vld [vmem:[#allocation6 + $0x10] sm:$0xff]   ;;  %s3506_s12 = scalar_lea.vmem %s4132_s9, 2048  ;;  %s3604_s21 = smov [#allocation11]  }
  0x62   : > { %3029 = vmatprep.mubr.bf16.mxu0 %v3264_v4  ;;  %v3280_v9 = vld [vmem:[#allocation6 + $0xc0] sm:$0xff]   ;;  %v3281_v12 = vld [vmem:[#allocation6 + $0xc8] sm:$0xff]   ;;  %v3284_v13 = vld [vmem:[#allocation6 + $0xd0] sm:$0xff]   ;;  %p3507_p10 = scmp.ne.s32.totalorder %s4132_s9, %s3506_s12  ;;  %s3510_s24 = sshll.u32 %s3604_s21, 4  ;;  %s3511_s24 = int_to_ptr.vmem [resolvable:$false] %s3510_s24 }
  0x63   : > { %3077 = vmatprep.mubr.bf16.mxu1 %v3280_v9  ;;  %v3267_v14 = vld [vmem:[#allocation6 + $0x18] sm:$0xff]   ;;  %v3268_v15 = vld [vmem:[#allocation6 + $0x20] sm:$0xff]   ;;  %v3269_v18 = vld [vmem:[#allocation6 + $0x28] sm:$0xff]   ;;  %s3512_s25 = scalar_lea.vmem %s3511_s24, 4096  ;;  %p3513_p7 = scmp.lt.s32.totalorder %s4132_s9, %s3511_s24 }
  0x64   : > { %3016 = vmatpush3.bf16.msra.mxu0 %v3257_v1  ;;  %3150 = vmatpush3.bf16.msra.mxu1 %v3257_v1  ;;  %v3285_v16 = vld [vmem:[#allocation6 + $0xd8] sm:$0xff]   ;;  %v3288_v17 = vld [vmem:[#allocation6 + $0xe0] sm:$0xff]   ;;  %v3289_v19 = vld [vmem:[#allocation6 + $0xe8] sm:$0xff]   ;;  %p3508_p2 = pnand %p3507_p10, %p3737_p0  ;;  %p3514_p6 = scmp.lt.s32.totalorder %s3512_s25, %s3506_s12 }
  0x65   : > { %3017 = vmatprep.subr.bf16.mxu0 %v3258_v2  ;;  %3143 = vmatprep.subr.bf16.mxu1 %v3258_v2  ;;  %v3270_v20 = vld [vmem:[#allocation6 + $0x30] sm:$0xff]   ;;  %v3271_v22 = vld [vmem:[#allocation6 + $0x38] sm:$0xff]   ;;  %v3272_v24 = vld [vmem:[#allocation6 + $0x40] sm:$0xff]  }
  0x66   : > { %v3292_v21 = vld [vmem:[#allocation6 + $0xf0] sm:$0xff]   ;;  %v3293_v23 = vld [vmem:[#allocation6 + $0xf8] sm:$0xff]   ;;  %v3273_v25 = vld [vmem:[#allocation6 + $0x48] sm:$0xff]   ;;  %p3509_p11 = pneg %p3508_p2  ;;  %p3515_p9 = por %p3514_p6, %p3513_p7 }
  0x67   : > { %v3274_v26 = vld [vmem:[#allocation6 + $0x50] sm:$0xff]   ;;  %v3275_v27 = vld [vmem:[#allocation6 + $0x58] sm:$0xff]   ;;  %v3276_v28 = vld [vmem:[#allocation6 + $0x60] sm:$0xff]  }
  0x68   : > { %3018 = vmatpush3.bf16.msra.mxu0 %v3258_v2  ;;  %3151 = vmatpush3.bf16.msra.mxu1 %v3258_v2  ;;  %v3277_v29 = vld [vmem:[#allocation6 + $0x68] sm:$0xff]   ;;  %v3278_v30 = vld [vmem:[#allocation6 + $0x70] sm:$0xff]   ;;  %v3279_v31 = vld [vmem:[#allocation6 + $0x78] sm:$0xff]   ;;  %p3516_p13 = pnand %p3515_p9, %p3509_p11 }
  0x69   : > { %3019 = vmatprep.subr.bf16.mxu0 %v3259_v3  ;;  %3144 = vmatprep.subr.bf16.mxu1 %v3259_v3  ;;  %v3282_v32 = vld [vmem:[#allocation6 + $0x80] sm:$0xff]   ;;  %v3283_v33 = vld [vmem:[#allocation6 + $0x88] sm:$0xff]   ;;  %v3286_v34 = vld [vmem:[#allocation6 + $0x90] sm:$0xff]  }
  0x6a   : > { %v3287_v35 = vld [vmem:[#allocation6 + $0x98] sm:$0xff]   ;;  %v3290_v36 = vld [vmem:[#allocation6 + $0xa0] sm:$0xff]   ;;  %v3291_v37 = vld [vmem:[#allocation6 + $0xa8] sm:$0xff]  }
  0x6b   : > { %v3294_v38 = vld [vmem:[#allocation6 + $0xb0] sm:$0xff]   ;;  %v3295_v39 = vld [vmem:[#allocation6 + $0xb8] sm:$0xff]  }
  0x6c   : > { %3020 = vmatpush3.bf16.msra.mxu0 %v3259_v3  ;;  %3152 = vmatpush3.bf16.msra.mxu1 %v3259_v3  ;;  %v3298_v40 = vld [vmem:[%s3771_s6 + $0x4] ss:$16 sps:$4 sm:$0xff]   ;;  %v3301_v41 = vld [vmem:[%s3771_s6 + $0xc] ss:$16 sps:$4 sm:$0xff]  }
  0x6d   : > { %3021 = vmatprep.subr.bf16.mxu0 %v3260_v5  ;;  %3145 = vmatprep.subr.bf16.mxu1 %v3260_v5 }
  0x70   : > { %3022 = vmatpush3.bf16.msra.mxu0 %v3260_v5  ;;  %3153 = vmatpush3.bf16.msra.mxu1 %v3260_v5 }
  0x71   : > { %3023 = vmatprep.subr.bf16.mxu0 %v3261_v6  ;;  %3146 = vmatprep.subr.bf16.mxu1 %v3261_v6 }
  0x74   : > { %3024 = vmatpush3.bf16.msra.mxu0 %v3261_v6  ;;  %3154 = vmatpush3.bf16.msra.mxu1 %v3261_v6 }
  0x75   : > { %3025 = vmatprep.subr.bf16.mxu0 %v3262_v7  ;;  %3147 = vmatprep.subr.bf16.mxu1 %v3262_v7 }
  0x78   : > { %3026 = vmatpush3.bf16.msra.mxu0 %v3262_v7  ;;  %3155 = vmatpush3.bf16.msra.mxu1 %v3262_v7 }
  0x79   : > { %3027 = vmatprep.subr.bf16.mxu0 %v3263_v8  ;;  %3148 = vmatprep.subr.bf16.mxu1 %v3263_v8 }
  0x7c   : > { %3028 = vmatpush3.bf16.msra.mxu0 %v3263_v8  ;;  %3156 = vmatpush3.bf16.msra.mxu1 %v3263_v8 }
  0x7f   : > { %3030 = vmatmul.mubr.bf16.vlgmr.msra.gmra.mxu0 %v3265_v10  ;;  %3078 = vmatmul.mubr.bf16.vlgmr.msra.gmra.mxu1 %v3281_v12 }
  0x80   : > { %3033 = vmatprep.mubr.bf16.mxu0 %v3266_v11  ;;  %3081 = vmatprep.mubr.bf16.mxu1 %v3284_v13 }
  0x87   : > { %3034 = vmatmul.mubr.bf16.gmra.mxu0 %v3267_v14  ;;  %3082 = vmatmul.mubr.bf16.gmra.mxu1 %v3285_v16 }
  0x88   : > { %3037 = vmatprep.mubr.bf16.mxu0 %v3268_v15  ;;  %3085 = vmatprep.mubr.bf16.mxu1 %v3288_v17 }
  0x8f   : > { %3038 = vmatmul.mubr.bf16.gmra.mxu0 %v3269_v18  ;;  %3086 = vmatmul.mubr.bf16.gmra.mxu1 %v3289_v19 }
  0x90   : > { %3041 = vmatprep.mubr.bf16.mxu0 %v3270_v20  ;;  %3089 = vmatprep.mubr.bf16.mxu1 %v3292_v21 }
  0x97   : > { %3042 = vmatmul.mubr.bf16.gmra.mxu0 %v3271_v22  ;;  %3090 = vmatmul.mubr.bf16.gmra.mxu1 %v3293_v23 }
  0x98   : > { %3045 = vmatprep.mubr.bf16.mxu0 %v3272_v24  ;;  %1438 = vmatprep.mubr.bf16.mxu1 %v3298_v40 }
  0x9f   : > { %3046 = vmatmul.mubr.bf16.gmra.mxu0 %v3273_v25 }
  0xa0   : > { %3049 = vmatprep.mubr.bf16.mxu0 %v3274_v26 }
  0xa7   : > { %3050 = vmatmul.mubr.bf16.gmra.mxu0 %v3275_v27 }
  0xa8   : > { %3053 = vmatprep.mubr.bf16.mxu0 %v3276_v28 }
  0xaf   : > { %3054 = vmatmul.mubr.bf16.gmra.mxu0 %v3277_v29 }
  0xb0   : > { %3057 = vmatprep.mubr.bf16.mxu0 %v3278_v30 }
  0xb7   : > { %3058 = vmatmul.mubr.bf16.gmra.mxu0 %v3279_v31 }
  0xb8   : > { %3061 = vmatprep.mubr.bf16.mxu0 %v3282_v32 }
  0xbf   : > { %3062 = vmatmul.mubr.bf16.gmra.mxu0 %v3283_v33 }
  0xc0   : > { %3065 = vmatprep.mubr.bf16.mxu0 %v3286_v34 }
  0xc7   : > { %3066 = vmatmul.mubr.bf16.gmra.mxu0 %v3287_v35 }
  0xc8   : > { %3069 = vmatprep.mubr.bf16.mxu0 %v3290_v36 }
  0xcf   : > { %3070 = vmatmul.mubr.bf16.gmra.mxu0 %v3291_v37 }
  0xd0   : > { %3073 = vmatprep.mubr.bf16.mxu0 %v3294_v38 }
  0xd7   : > { %3074 = vmatmul.mubr.bf16.gmra.mxu0 %v3295_v39 }
  0xd8   : > { %1599 = vmatprep.mubr.bf16.mxu0 %v3301_v41 }
 0x13f   : > { %v3787_v42 = vpop.f32.mrf.mxu0  ;;  %v3789_v43 = vpop.f32.mrf.mxu1 }
 0x141   : > { %v3791_v44 = vpop.f32.mrf.mxu0  ;;  %v3793_v45 = vpop.f32.mrf.mxu1 }
 0x143   : > { %v3795_v46 = vpop.f32.mrf.mxu0  ;;  %v3797_v47 = vpop.f32.mrf.mxu1 }
 0x144   : > { %v1055_v48 = vpack.c.bf16 %v3795_v46, %v3787_v42  ;;  %v1079_v49 = vpack.c.bf16 %v3797_v47, %v3789_v43  ;;  %v3306_v46 = vld [vmem:[%s3771_s6 + $0x20] ss:$16 sps:$4 sm:$0xff]   ;;  %v3299_v43 = vld [vmem:[%s3771_s6 + $0x8] ss:$16 sps:$4 sm:$0xff]   ;;  %v3304_v47 = vld [vmem:[%s3771_s6 + $0x2c] ss:$16 sps:$4 sm:$0xff]  }
 0x145   : > { %v3803_v50 = vpop.f32.mrf.mxu0  ;;  %v3805_v51 = vpop.f32.mrf.mxu1 }
 0x146   : > { %v1054_v52 = vpack.c.bf16 %v3803_v50, %v3791_v44  ;;  %v3308_v44 = vld [vmem:[%s3771_s6 + $0x44] ss:$16 sps:$4 sm:$0xff]  }
 0x147   : > { %v3811_v54 = vpop.f32.mrf.mxu0  ;;  %v3813_v55 = vpop.f32.mrf.mxu1 }
 0x149   : > { %v3815_v56 = vpop.f32.mrf.mxu0  ;;  %v3817_v57 = vpop.f32.mrf.mxu1 }
 0x14b   : > { %v3819_v58 = vpop.f32.mrf.mxu0  ;;  %v3821_v59 = vpop.f32.mrf.mxu1 }
 0x14c   : > { %v1057_v60 = vpack.c.bf16 %v3819_v58, %v3811_v54  ;;  %v1081_v61 = vpack.c.bf16 %v3821_v59, %v3813_v55  ;;  %v3320_v55 = vld [vmem:[%s3771_s6 + $0x84] ss:$16 sps:$4 sm:$0xff]  }
 0x14d   : > { %v3827_v62 = vpop.f32.mrf.mxu0  ;;  %v3829_v63 = vpop.f32.mrf.mxu1 }
 0x14e   : > { %v1056_v0 = vpack.c.bf16 %v3827_v62, %v3815_v56  ;;  %v1080_v1 = vpack.c.bf16 %v3829_v63, %v3817_v57  ;;  %v3302_v56 = vld [vmem:[%s3771_s6 + $0x24] ss:$16 sps:$4 sm:$0xff]   ;;  %v4205_v63 = vpack.c.bf16 %v3805_v51, %v3793_v45  ;;  %v3307_v45 = vld [vmem:[%s3771_s6 + $0x28] ss:$16 sps:$4 sm:$0xff]   ;;  %v3310_v51 = vld [vmem:[%s3771_s6 + $0x4c] ss:$16 sps:$4 sm:$0xff]  }
 0x14f   : > { %v3039_v2 = vpop.f32.mrf.mxu0  ;;  %v3835_v3 = vpop.f32.mrf.mxu1  ;;  %v3393_v57 = vld [vmem:[#allocation9 + $0x30] sm:$0xff]  }
 0x151   : > { %v735_v4 = vpop.f32.mrf.mxu0  ;;  %v3837_v5 = vpop.f32.mrf.mxu1 }
 0x153   : > { %v3040_v6 = vpop.f32.mrf.mxu0  ;;  %v3839_v7 = vpop.f32.mrf.mxu1 }
 0x154   : > { %v1083_v8 = vpack.c.bf16 %v3839_v7, %v3835_v3  ;;  %v3314_v3 = vld [vmem:[%s3771_s6 + $0x64] ss:$16 sps:$4 sm:$0xff]  }
 0x155   : > { %v738_v9 = vpop.f32.mrf.mxu0  ;;  %v3843_v10 = vpop.f32.mrf.mxu1 }
 0x156   : > { %v1082_v11 = vpack.c.bf16 %v3843_v10, %v3837_v5  ;;  %v3326_v10 = vld [vmem:[%s3771_s6 + $0xa4] ss:$16 sps:$4 sm:$0xff]  }
 0x157   : > { %v3043_v12 = vpop.f32.mrf.mxu0  ;;  %v3091_v13 = vpop.f32.mrf.mxu1 }
 0x159   : > { %v751_v14 = vpop.f32.mrf.mxu0  ;;  %v3847_v15 = vpop.f32.mrf.mxu1 }
 0x15b   : > { %v3044_v16 = vpop.f32.mrf.mxu0  ;;  %v3092_v17 = vpop.f32.mrf.mxu1 }
 0x15c   : > { %v1085_v18 = vpack.c.bf16 %v3092_v17, %v3091_v13  ;;  %v1061_v36 = vpack.c.bf16 %v3044_v16, %v3043_v12  ;;  %v1058_v16 = vpack.c.bf16 %v738_v9, %v735_v4 }
 0x15d   : > { %v754_v19 = vpop.f32.mrf.mxu0  ;;  %v946_v58 = vpop.f32.mrf.mxu1 }
 0x15e   : > { %2877 = vmatprep.subr.bf16.mxu0 %v1085_v18  ;;  %v1060_v40 = vpack.c.bf16 %v754_v19, %v751_v14  ;;  %v1059_v18 = vpack.c.bf16 %v3040_v6, %v3039_v2 }
 0x15f   : > { %v3047_v20 = vpop.f32.mrf.mxu0 }
 0x161   : > { %v767_v21 = vpop.f32.mrf.mxu0 }
 0x163   : > { %v3048_v22 = vpop.f32.mrf.mxu0 }
 0x164   : > { %v1063_v6 = vpack.c.bf16 %v3048_v22, %v3047_v20  ;;  %v3313_v22 = vld [vmem:[%s3771_s6 + $0x48] ss:$16 sps:$4 sm:$0xff]  }
 0x165   : > { %v770_v23 = vpop.f32.mrf.mxu0 }
 0x166   : > { %v1062_v9 = vpack.c.bf16 %v770_v23, %v767_v21  ;;  %v3316_v23 = vld [vmem:[%s3771_s6 + $0x6c] ss:$16 sps:$4 sm:$0xff]  }
 0x167   : > { %v3051_v24 = vpop.f32.mrf.mxu0 }
 0x169   : > { %v783_v25 = vpop.f32.mrf.mxu0 }
 0x16b   : > { %v3052_v26 = vpop.f32.mrf.mxu0 }
 0x16d   : > { %v786_v27 = vpop.f32.mrf.mxu0 }
 0x16e   : > { %v1064_v19 = vpack.c.bf16 %v786_v27, %v783_v25  ;;  %v3336_v25 = vld [vmem:[%s3771_s6 + $0xc0] ss:$16 sps:$4 sm:$0xff]   ;;  %v3319_v27 = vld [vmem:[%s3771_s6 + $0x68] ss:$16 sps:$4 sm:$0xff]  }
 0x16f   : > { %v3055_v28 = vpop.f32.mrf.mxu0 }
 0x171   : > { %v799_v29 = vpop.f32.mrf.mxu0 }
 0x173   : > { %v3056_v30 = vpop.f32.mrf.mxu0 }
 0x174   : > { %v1067_v13 = vpack.c.bf16 %v3056_v30, %v3055_v28  ;;  %v3322_v30 = vld [vmem:[%s3771_s6 + $0x8c] ss:$16 sps:$4 sm:$0xff]  }
 0x175   : > { %v802_v31 = vpop.f32.mrf.mxu0 }
 0x177   : > { %v3059_v32 = vpop.f32.mrf.mxu0 }
 0x179   : > { %v815_v33 = vpop.f32.mrf.mxu0 }
 0x17b   : > { %v3060_v34 = vpop.f32.mrf.mxu0 }
 0x17c   : > { %v1069_v35 = vpack.c.bf16 %v3060_v34, %v3059_v32  ;;  %v1066_v32 = vpack.c.bf16 %v802_v31, %v799_v29  ;;  %v1065_v34 = vpack.c.bf16 %v3052_v26, %v3051_v24  ;;  %v3338_v26 = vld [vmem:[%s3771_s6 + $0xe4] ss:$16 sps:$4 sm:$0xff]   ;;  %v3342_v31 = vld [vmem:[%s3771_s6 + $0xe0] ss:$16 sps:$4 sm:$0xff]  }
 0x17d   : > { %v818_v37 = vpop.f32.mrf.mxu0 }
 0x17e   : > { %v1068_v38 = vpack.c.bf16 %v818_v37, %v815_v33  ;;  %2765 = vmatprep.subr.bf16.mxu1 %v1069_v35  ;;  %v3325_v37 = vld [vmem:[%s3771_s6 + $0x88] ss:$16 sps:$4 sm:$0xff]  }
 0x17f   : > { %v3849_v39 = vpop.f32.mrf.mxu0  ;;  %2766 = vmatpush3.bf16.msra.mxu1 %v1061_v36  ;;  %v3344_v36 = vld [vmem:[%s3771_s6 + $0x104] ss:$16 sps:$4 sm:$0xff]  }
 0x180   : > { %2767 = vmatprep.subr.bf16.mxu1 %v1068_v38  ;;  %v3328_v38 = vld [vmem:[%s3771_s6 + $0xac] ss:$16 sps:$4 sm:$0xff]  }
 0x181   : > { %v3851_v41 = vpop.f32.mrf.mxu0 }
 0x183   : > { %v3853_v17 = vpop.f32.mrf.mxu0  ;;  %2768 = vmatpush3.bf16.msra.mxu1 %v1060_v40  ;;  %v3350_v40 = vld [vmem:[%s3771_s6 + $0x124] ss:$16 sps:$4 sm:$0xff]  }
 0x184   : > { %2769 = vmatprep.subr.bf16.mxu1 %v1067_v13  ;;  %v1071_v59 = vpack.c.bf16 %v3853_v17, %v3849_v39  ;;  %v3348_v39 = vld [vmem:[%s3771_s6 + $0x100] ss:$16 sps:$4 sm:$0xff]   ;;  %v3334_v13 = vld [vmem:[%s3771_s6 + $0xcc] ss:$16 sps:$4 sm:$0xff]  }
 0x185   : > { %v3855_v53 = vpop.f32.mrf.mxu0  ;;  %v3354_v17 = vld [vmem:[%s3771_s6 + $0x120] ss:$16 sps:$4 sm:$0xff]  }
 0x187   : > { %v3067_v12 = vpop.f32.mrf.mxu0  ;;  %2770 = vmatpush3.bf16.msra.mxu1 %v1059_v18  ;;  %v3356_v18 = vld [vmem:[%s3771_s6 + $0x144] ss:$16 sps:$4 sm:$0xff]  }
 0x188   : > { %2771 = vmatprep.subr.bf16.mxu1 %v1066_v32  ;;  %v3337_v32 = vld [vmem:[%s3771_s6 + $0xc8] ss:$16 sps:$4 sm:$0xff]  }
 0x189   : > { %v847_v33 = vpop.f32.mrf.mxu0 }
 0x18b   : > { %v3068_v35 = vpop.f32.mrf.mxu0  ;;  %2772 = vmatpush3.bf16.msra.mxu1 %v1058_v16  ;;  %v3360_v16 = vld [vmem:[%s3771_s6 + $0x140] ss:$16 sps:$4 sm:$0xff]  }
 0x18c   : > { %2773 = vmatprep.subr.bf16.mxu1 %v1065_v34  ;;  %v1073_v7 = vpack.c.bf16 %v3068_v35, %v3067_v12  ;;  %v3340_v12 = vld [vmem:[%s3771_s6 + $0xec] ss:$16 sps:$4 sm:$0xff]   ;;  %v3343_v34 = vld [vmem:[%s3771_s6 + $0xe8] ss:$16 sps:$4 sm:$0xff]  }
 0x18d   : > { %v850_v14 = vpop.f32.mrf.mxu0  ;;  %v3346_v35 = vld [vmem:[%s3771_s6 + $0x10c] ss:$16 sps:$4 sm:$0xff]  }
 0x18e   : > { %v1072_v5 = vpack.c.bf16 %v850_v14, %v847_v33  ;;  %v3362_v33 = vld [vmem:[%s3771_s6 + $0x164] ss:$16 sps:$4 sm:$0xff]   ;;  %v3366_v14 = vld [vmem:[%s3771_s6 + $0x160] ss:$16 sps:$4 sm:$0xff]  }
 0x18f   : > { %v3071_v28 = vpop.f32.mrf.mxu0  ;;  %2774 = vmatpush3.bf16.msra.mxu1 %v1057_v60  ;;  %v3296_v60 = vld [vmem:[%s3771_s6] ss:$16 sps:$4 sm:$0xff]  }
 0x190   : > { %2775 = vmatprep.subr.bf16.mxu1 %v1064_v19  ;;  %v3368_v19 = vld [vmem:[%s3771_s6 + $0x184] ss:$16 sps:$4 sm:$0xff]  }
 0x191   : > { %v863_v2 = vpop.f32.mrf.mxu0 }
 0x193   : > { %v3072_v29 = vpop.f32.mrf.mxu0  ;;  %2776 = vmatpush3.bf16.msra.mxu1 %v1056_v0  ;;  %v1084_v0 = vpack.c.bf16 %v946_v58, %v3847_v15  ;;  %v3332_v15 = vld [vmem:[%s3771_s6 + $0xc4] ss:$16 sps:$4 sm:$0xff]  }
 0x194   : > { %2777 = vmatprep.subr.bf16.mxu1 %v1063_v6  ;;  %v3372_v6 = vld [vmem:[%s3771_s6 + $0x180] ss:$16 sps:$4 sm:$0xff]   ;;  %v3380_v58 = vld [vmem:[%s3771_s6 + $0x1c4] ss:$16 sps:$4 sm:$0xff]  }
 0x195   : > { %v866_v4 = vpop.f32.mrf.mxu0 }
 0x196   : > { %v1074_v50 = vpack.c.bf16 %v866_v4, %v863_v2  ;;  %v3352_v2 = vld [vmem:[%s3771_s6 + $0x12c] ss:$16 sps:$4 sm:$0xff]   ;;  %v3395_v4 = vld [vmem:[#allocation9 + $0x20] sm:$0xff]  }
 0x197   : > { %v3075_v24 = vpop.f32.mrf.mxu0  ;;  %2778 = vmatpush3.bf16.msra.mxu1 %v1055_v48  ;;  %v1075_v48 = vpack.c.bf16 %v3072_v29, %v3071_v28  ;;  %v3349_v28 = vld [vmem:[%s3771_s6 + $0x108] ss:$16 sps:$4 sm:$0xff]   ;;  %v3374_v29 = vld [vmem:[%s3771_s6 + $0x1a4] ss:$16 sps:$4 sm:$0xff]  }
 0x198   : > { %2779 = vmatprep.subr.bf16.mxu1 %v1062_v9  ;;  %v3355_v9 = vld [vmem:[%s3771_s6 + $0x128] ss:$16 sps:$4 sm:$0xff]  }
 0x199   : > { %v879_v54 = vpop.f32.mrf.mxu0 }
 0x19b   : > { %v3076_v20 = vpop.f32.mrf.mxu0  ;;  %2780 = vmatpush3.bf16.msra.mxu1 %v1054_v52  ;;  %v3312_v52 = vld [vmem:[%s3771_s6 + $0x40] ss:$16 sps:$4 sm:$0xff]  }
 0x19c   : > { %v1077_v62 = vpack.c.bf16 %v3076_v20, %v3075_v24  ;;  %v3358_v24 = vld [vmem:[%s3771_s6 + $0x14c] ss:$16 sps:$4 sm:$0xff]   ;;  %v3397_v20 = vld [vmem:[#allocation9 + $0x10] sm:$0xff]  }
 0x19d   : > { %v882_v21 = vpop.f32.mrf.mxu0 }
 0x19e   : > { %2878 = vmatpush3.bf16.msra.mxu0 %v1077_v62  ;;  %1439 = vmatmul.mubr.bf16.vlgmr.msra.gmra.mxu1 %v3296_v60  ;;  %v1076_v42 = vpack.c.bf16 %v882_v21, %v879_v54  ;;  %v3378_v54 = vld [vmem:[%s3771_s6 + $0x1a0] ss:$16 sps:$4 sm:$0xff]   ;;  %v3396_v60 = vld [vmem:[#allocation9 + $0x18] sm:$0xff]   ;;  %v3386_v21 = vld [vmem:[%s3771_s6 + $0x1e4] ss:$16 sps:$4 sm:$0xff]  }
 0x19f   : > { %2879 = vmatprep.subr.bf16.mxu0 %v1084_v0  ;;  %1446 = vmatprep.mubr.bf16.mxu1 %v3302_v56  ;;  %v3361_v56 = vld [vmem:[%s3771_s6 + $0x148] ss:$16 sps:$4 sm:$0xff]   ;;  %v3364_v62 = vld [vmem:[%s3771_s6 + $0x16c] ss:$16 sps:$4 sm:$0xff]   ;;  %v3384_v0 = vld [vmem:[%s3771_s6 + $0x1c0] ss:$16 sps:$4 sm:$0xff]  }
 0x1a2   : > { %2880 = vmatpush3.bf16.msra.mxu0 %v1076_v42  ;;  %v3398_v42 = vld [vmem:[#allocation9 + $0x8] sm:$0xff]  }
 0x1a3   : > { %2881 = vmatprep.subr.bf16.mxu0 %v1083_v8  ;;  %v3318_v8 = vld [vmem:[%s3771_s6 + $0x60] ss:$16 sps:$4 sm:$0xff]  }
 0x1a6   : > { %2882 = vmatpush3.bf16.msra.mxu0 %v1075_v48  ;;  %1447 = vmatmul.mubr.bf16.gmra.mxu1 %v3306_v46  ;;  %v3399_v46 = vld [vmem:[#allocation9] sm:$0xff]   ;;  %v3370_v48 = vld [vmem:[%s3771_s6 + $0x18c] ss:$16 sps:$4 sm:$0xff]  }
 0x1a7   : > { %2883 = vmatprep.subr.bf16.mxu0 %v1082_v11  ;;  %1454 = vmatprep.mubr.bf16.mxu1 %v3308_v44  ;;  %v3394_v11 = vld [vmem:[#allocation9 + $0x28] sm:$0xff]  }
 0x1a8   : > { %v3367_v44 = vld [vmem:[%s3771_s6 + $0x168] ss:$16 sps:$4 sm:$0xff]  }
 0x1aa   : > { %2884 = vmatpush3.bf16.msra.mxu0 %v1074_v50  ;;  %v3390_v50 = vld [vmem:[%s3771_s6 + $0x1e0] ss:$16 sps:$4 sm:$0xff]  }
 0x1ab   : > { %2885 = vmatprep.subr.bf16.mxu0 %v1081_v61  ;;  %v3392_v61 = vld [vmem:[#allocation9 + $0x38] sm:$0xff]  }
 0x1ac   : > { %3093 = vmatprep.subr.bf16.mxu1 %v3392_v61 }
 0x1ad   : > { %3094 = vmatpush3.bf16.msra.mxu1 %v3392_v61 }
 0x1ae   : > { %2886 = vmatpush3.bf16.msra.mxu0 %v1073_v7  ;;  %1455 = vmatmul.mubr.bf16.gmra.mxu1 %v3312_v52  ;;  %v3373_v52 = vld [vmem:[%s3771_s6 + $0x188] ss:$16 sps:$4 sm:$0xff]  }
 0x1af   : > { %2887 = vmatprep.subr.bf16.mxu0 %v1080_v1  ;;  %1462 = vmatprep.mubr.bf16.mxu1 %v3314_v3  ;;  %v1070_v1 = vpack.c.bf16 %v3855_v53, %v3851_v41  ;;  %v3330_v53 = vld [vmem:[%s3771_s6 + $0xa0] ss:$16 sps:$4 sm:$0xff]   ;;  %v3331_v41 = vld [vmem:[%s3771_s6 + $0xa8] ss:$16 sps:$4 sm:$0xff]   ;;  %v3376_v3 = vld [vmem:[%s3771_s6 + $0x1ac] ss:$16 sps:$4 sm:$0xff]  }
 0x1b0   : > { %3095 = vmatprep.subr.bf16.mxu1 %v3393_v57  ;;  %v3379_v7 = vld [vmem:[%s3771_s6 + $0x1a8] ss:$16 sps:$4 sm:$0xff]  }
 0x1b1   : > { %3096 = vmatpush3.bf16.msra.mxu1 %v3393_v57 }
 0x1b2   : > { %2888 = vmatpush3.bf16.msra.mxu0 %v1072_v5  ;;  %3097 = vmatprep.subr.bf16.mxu1 %v3394_v11  ;;  %v3382_v5 = vld [vmem:[%s3771_s6 + $0x1cc] ss:$16 sps:$4 sm:$0xff]  }
 0x1b3   : > { %2889 = vmatprep.subr.bf16.mxu0 %v1079_v49  ;;  %v3324_v49 = vld [vmem:[%s3771_s6 + $0x80] ss:$16 sps:$4 sm:$0xff]  }
 0x1b5   : > { %3098 = vmatpush3.bf16.msra.mxu1 %v3394_v11 }
 0x1b6   : > { %2890 = vmatpush3.bf16.msra.mxu0 %v1071_v59  ;;  %1463 = vmatmul.mubr.bf16.gmra.mxu1 %v3318_v8  ;;  %v3385_v8 = vld [vmem:[%s3771_s6 + $0x1c8] ss:$16 sps:$4 sm:$0xff]  }
 0x1b7   : > { %2891 = vmatprep.subr.bf16.mxu0 %v4205_v63  ;;  %1470 = vmatprep.mubr.bf16.mxu1 %v3320_v55  ;;  %v3388_v55 = vld [vmem:[%s3771_s6 + $0x1ec] ss:$16 sps:$4 sm:$0xff]   ;;  %v3391_v59 = vld [vmem:[%s3771_s6 + $0x1e8] ss:$16 sps:$4 sm:$0xff]  }
 0x1b8   : > { %3099 = vmatprep.subr.bf16.mxu1 %v3395_v4 }
 0x1b9   : > { %3100 = vmatpush3.bf16.msra.mxu1 %v3395_v4 }
 0x1ba   : > { %2892 = vmatpush3.bf16.msra.mxu0 %v1070_v1  ;;  %3101 = vmatprep.subr.bf16.mxu1 %v3396_v60 }
 0x1bd   : > { %1600 = vmatmul.mubr.bf16.vlgmr.msra.gmra.mxu0 %v3299_v43  ;;  %3102 = vmatpush3.bf16.msra.mxu1 %v3396_v60 }
 0x1be   : > { %1607 = vmatprep.mubr.bf16.mxu0 %v3304_v47  ;;  %1471 = vmatmul.mubr.bf16.gmra.mxu1 %v3324_v49 }
 0x1bf   : > { %1478 = vmatprep.mubr.bf16.mxu1 %v3326_v10  ;;  %3103 = vmatprep.subr.bf16.mxu1 %v3397_v20 }
 0x1c1   : > { %3104 = vmatpush3.bf16.msra.mxu1 %v3397_v20 }
 0x1c2   : > { %3105 = vmatprep.subr.bf16.mxu1 %v3398_v42 }
 0x1c5   : > { %1608 = vmatmul.mubr.bf16.gmra.mxu0 %v3307_v45  ;;  %3106 = vmatpush3.bf16.msra.mxu1 %v3398_v42 }
 0x1c6   : > { %1615 = vmatprep.mubr.bf16.mxu0 %v3310_v51  ;;  %1479 = vmatmul.mubr.bf16.gmra.mxu1 %v3330_v53 }
 0x1c7   : > { %1486 = vmatprep.mubr.bf16.mxu1 %v3332_v15  ;;  %3107 = vmatprep.subr.bf16.mxu1 %v3399_v46 }
 0x1c9   : > { %3108 = vmatpush3.bf16.msra.mxu1 %v3399_v46 }
 0x1cd   : > { %1616 = vmatmul.mubr.bf16.gmra.mxu0 %v3313_v22 }
 0x1ce   : > { %1623 = vmatprep.mubr.bf16.mxu0 %v3316_v23  ;;  %1487 = vmatmul.mubr.bf16.gmra.mxu1 %v3336_v25 }
 0x1cf   : > { %1494 = vmatprep.mubr.bf16.mxu1 %v3338_v26 }
 0x1d5   : > { %1624 = vmatmul.mubr.bf16.gmra.mxu0 %v3319_v27 }
 0x1d6   : > { %1631 = vmatprep.mubr.bf16.mxu0 %v3322_v30  ;;  %1495 = vmatmul.mubr.bf16.gmra.mxu1 %v3342_v31 }
 0x1d7   : > { %1502 = vmatprep.mubr.bf16.mxu1 %v3344_v36 }
 0x1dd   : > { %1632 = vmatmul.mubr.bf16.gmra.mxu0 %v3325_v37 }
 0x1de   : > { %1639 = vmatprep.mubr.bf16.mxu0 %v3328_v38  ;;  %1503 = vmatmul.mubr.bf16.gmra.mxu1 %v3348_v39 }
 0x1df   : > { %1510 = vmatprep.mubr.bf16.mxu1 %v3350_v40 }
 0x1e5   : > { %1640 = vmatmul.mubr.bf16.gmra.mxu0 %v3331_v41  ;;  %v3971_v41 = vld [vmem:[%s4185_s3] ss:$0 sm:$0xff] }
 0x1e6   : > { %1647 = vmatprep.mubr.bf16.mxu0 %v3334_v13  ;;  %1511 = vmatmul.mubr.bf16.gmra.mxu1 %v3354_v17 }
 0x1e7   : > { %1518 = vmatprep.mubr.bf16.mxu1 %v3356_v18 }
 0x1ed   : > { %1648 = vmatmul.mubr.bf16.gmra.mxu0 %v3337_v32 }
 0x1ee   : > { %1655 = vmatprep.mubr.bf16.mxu0 %v3340_v12  ;;  %1519 = vmatmul.mubr.bf16.gmra.mxu1 %v3360_v16 }
 0x1ef   : > { %1526 = vmatprep.mubr.bf16.mxu1 %v3362_v33 }
 0x1f5   : > { %1656 = vmatmul.mubr.bf16.gmra.mxu0 %v3343_v34 }
 0x1f6   : > { %1663 = vmatprep.mubr.bf16.mxu0 %v3346_v35  ;;  %1527 = vmatmul.mubr.bf16.gmra.mxu1 %v3366_v14 }
 0x1f7   : > { %1534 = vmatprep.mubr.bf16.mxu1 %v3368_v19 }
 0x1fd   : > { %1664 = vmatmul.mubr.bf16.gmra.mxu0 %v3349_v28 }
 0x1fe   : > { %1671 = vmatprep.mubr.bf16.mxu0 %v3352_v2  ;;  %1535 = vmatmul.mubr.bf16.gmra.mxu1 %v3372_v6 }
 0x1ff   : > { %1542 = vmatprep.mubr.bf16.mxu1 %v3374_v29 }
 0x205   : > { %1672 = vmatmul.mubr.bf16.gmra.mxu0 %v3355_v9 }
 0x206   : > { %1679 = vmatprep.mubr.bf16.mxu0 %v3358_v24  ;;  %1543 = vmatmul.mubr.bf16.gmra.mxu1 %v3378_v54 }
 0x207   : > { %1550 = vmatprep.mubr.bf16.mxu1 %v3380_v58 }
 0x20d   : > { %1680 = vmatmul.mubr.bf16.gmra.mxu0 %v3361_v56 }
 0x20e   : > { %1687 = vmatprep.mubr.bf16.mxu0 %v3364_v62  ;;  %1551 = vmatmul.mubr.bf16.gmra.mxu1 %v3384_v0 }
 0x20f   : > { %1558 = vmatprep.mubr.bf16.mxu1 %v3386_v21 }
 0x215   : > { %1688 = vmatmul.mubr.bf16.gmra.mxu0 %v3367_v44 }
 0x216   : > { %1695 = vmatprep.mubr.bf16.mxu0 %v3370_v48  ;;  %1559 = vmatmul.mubr.bf16.gmra.mxu1 %v3390_v50 }
 0x21d   : > { %1696 = vmatmul.mubr.bf16.gmra.mxu0 %v3373_v52 }
 0x21e   : > { %1703 = vmatprep.mubr.bf16.mxu0 %v3376_v3 }
 0x225   : > { %1704 = vmatmul.mubr.bf16.gmra.mxu0 %v3379_v7 }
 0x226   : > { %1711 = vmatprep.mubr.bf16.mxu0 %v3382_v5 }
 0x22d   : > { %1712 = vmatmul.mubr.bf16.gmra.mxu0 %v3385_v8 }
 0x22e   : > { %1719 = vmatprep.mubr.bf16.mxu0 %v3388_v55 }
 0x235   : > { %1720 = vmatmul.mubr.bf16.gmra.mxu0 %v3391_v59 }
 0x25e   : > { %v2781_v61 = vpop.f32.mrf.mxu1 }
 0x260   : > { %v2782_v57 = vpop.f32.mrf.mxu1 }
 0x261   : > { %v2783_v31 = vadd.f32 %v2782_v57, %v2781_v61 }
 0x262   : > { %v2784_v63 = vpop.f32.mrf.mxu1 }
 0x264   : > { %v2785_v1 = vpop.f32.mrf.mxu1 }
 0x265   : > { %v2786_v17 = vadd.f32 %v2785_v1, %v2784_v63 }
 0x266   : > { %v2787_v43 = vpop.f32.mrf.mxu1 }
 0x268   : > { %v2788_v47 = vpop.f32.mrf.mxu1 }
 0x269   : > { %v2789_v19 = vadd.f32 %v2788_v47, %v2787_v43 }
 0x26a   : > { %v2790_v49 = vpop.f32.mrf.mxu1 }
 0x26c   : > { %v2791_v10 = vpop.f32.mrf.mxu1 }
 0x26d   : > { %v2792_v58 = vadd.f32 %v2791_v10, %v2790_v49 }
 0x26e   : > { %v2793_v11 = vpop.f32.mrf.mxu1 }
 0x270   : > { %v2794_v45 = vpop.f32.mrf.mxu1 }
 0x271   : > { %v2795_v48 = vadd.f32 %v2794_v45, %v2793_v11 }
 0x272   : > { %v2796_v51 = vpop.f32.mrf.mxu1 }
 0x274   : > { %v2797_v53 = vpop.f32.mrf.mxu1 }
 0x275   : > { %v2798_v57 = vadd.f32 %v2797_v53, %v2796_v51 }
 0x276   : > { %v3954_v15 = vpop.f32.mrf.mxu1 }
 0x278   : > { %v3956_v22 = vpop.f32.mrf.mxu1 }
 0x27a   : > { %v3958_v23 = vpop.f32.mrf.mxu1 }
 0x27c   : > { %v3960_v25 = vpop.f32.mrf.mxu1 }
 0x27d   : > { %v2893_v26 = vpop.f32.mrf.mxu0 }
 0x27e   : > { %v3962_v27 = vpop.f32.mrf.mxu1 }
 0x27f   : > { %v2894_v30 = vpop.f32.mrf.mxu0 }
 0x280   : > { %v2895_v36 = vadd.f32 %v2894_v30, %v2893_v26  ;;  %v3964_v37 = vpop.f32.mrf.mxu1  ;;  %v2801_v26 = vadd.f32 %v3956_v22, %v3954_v15 }
 0x281   : > { %v2896_v38 = vpop.f32.mrf.mxu0 }
 0x282   : > { %v1602_v39 = vadd.f32 %v2895_v36, %v2783_v31  ;;  %v3966_v40 = vpop.f32.mrf.mxu1 }
 0x283   : > { %v2897_v13 = vpop.f32.mrf.mxu0 }
 0x284   : > { %v2898_v18 = vadd.f32 %v2897_v13, %v2896_v38  ;;  %v3973_v32 = vpop.f32.mrf.mxu1  ;;  %v1834_v16 = vadd.f32 %v3971_v41, %v1602_v39 }
 0x285   : > { %v2899_v12 = vpop.f32.mrf.mxu0 }
 0x286   : > { %v1605_v33 = vadd.f32 %v2898_v18, %v2786_v17  ;;  %v3976_v34 = vpop.f32.mrf.mxu1  ;;  %v1866_v29 = vmax.f32 %v1834_v16, 0.0  ;;  %v2804_v17 = vadd.f32 %v3960_v25, %v3958_v23 }
 0x287   : > { %v2900_v35 = vpop.f32.mrf.mxu0 }
 0x288   : > { %v1835_v14 = vadd.f32 %v3971_v41, %v1605_v33  ;;  %v2901_v28 = vadd.f32 %v2900_v35, %v2899_v12  ;;  %v3979_v2 = vpop.f32.mrf.mxu1 }
 0x289   : > { %v2902_v6 = vpop.f32.mrf.mxu0 }
 0x28a   : > { %v1867_v4 = vmax.f32 %v1835_v14, 0.0  ;;  %v1610_v9 = vadd.f32 %v2901_v28, %v2789_v19  ;;  %v3981_v24 = vpop.f32.mrf.mxu1  ;;  %v2807_v28 = vadd.f32 %v3964_v37, %v3962_v27 }
 0x28b   : > { %v2903_v54 = vpop.f32.mrf.mxu0 }
 0x28c   : > { %v2904_v60 = vadd.f32 %v2903_v54, %v2902_v6  ;;  %v1898_v20 = vpack.c.bf16 %v1867_v4, %v1866_v29  ;;  %v3983_v56 = vpop.f32.mrf.mxu1  ;;  %v1836_v0 = vadd.f32 %v3971_v41, %v1610_v9 }
 0x28d   : > { %v2905_v62 = vpop.f32.mrf.mxu0 }
 0x28e   : > { %v1613_v21 = vadd.f32 %v2904_v60, %v2792_v58  ;;  %3109 = vmatprep.mubr.bf16.mxu1 %v1898_v20  ;;  %v3986_v42 = vpop.f32.mrf.mxu1  ;;  %v1868_v7 = vmax.f32 %v1836_v0, 0.0  ;;  %v2810_v60 = vadd.f32 %v3973_v32, %v3966_v40 }
 0x28f   : > { %v2906_v46 = vpop.f32.mrf.mxu0 }
 0x290   : > { %v1837_v44 = vadd.f32 %v3971_v41, %v1613_v21  ;;  %v2907_v50 = vadd.f32 %v2906_v46, %v2905_v62  ;;  %v3989_v52 = vpop.f32.mrf.mxu1 }
 0x291   : > { %v2908_v3 = vpop.f32.mrf.mxu0 }
 0x292   : > { %v1869_v5 = vmax.f32 %v1837_v44, 0.0  ;;  %v1618_v8 = vadd.f32 %v2907_v50, %v2795_v48  ;;  %v3991_v55 = vpop.f32.mrf.mxu1  ;;  %v2813_v50 = vadd.f32 %v3979_v2, %v3976_v34 }
 0x293   : > { %v2909_v59 = vpop.f32.mrf.mxu0 }
 0x294   : > { %v1899_v61 = vpack.c.bf16 %v1869_v5, %v1868_v7  ;;  %v2910_v63 = vadd.f32 %v2909_v59, %v2908_v3  ;;  %v3993_v1 = vpop.f32.mrf.mxu1  ;;  %v1838_v47 = vadd.f32 %v3971_v41, %v1618_v8 }
 0x295   : > { %v2911_v43 = vpop.f32.mrf.mxu0 }
 0x296   : > { %v1621_v49 = vadd.f32 %v2910_v63, %v2798_v57  ;;  %3110 = vmatmul.mubr.bf16.vlgmr.msra.gmra.mxu1 %v1899_v61  ;;  %v3996_v10 = vpop.f32.mrf.mxu1  ;;  %v1870_v53 = vmax.f32 %v1838_v47, 0.0  ;;  %v2816_v57 = vadd.f32 %v3983_v56, %v3981_v24 }
 0x297   : > { %v2912_v11 = vpop.f32.mrf.mxu0 }
 0x298   : > { %v1839_v45 = vadd.f32 %v3971_v41, %v1621_v49  ;;  %v2913_v30 = vadd.f32 %v2912_v11, %v2911_v43  ;;  %v4001_v31 = vpop.f32.mrf.mxu1 }
 0x299   : > { %v2914_v51 = vpop.f32.mrf.mxu0 }
 0x29a   : > { %v1871_v36 = vmax.f32 %v1839_v45, 0.0  ;;  %v1626_v38 = vadd.f32 %v2913_v30, %v2801_v26  ;;  %v4003_v39 = vpop.f32.mrf.mxu1  ;;  %v2819_v30 = vadd.f32 %v3989_v52, %v3986_v42 }
 0x29b   : > { %v2915_v13 = vpop.f32.mrf.mxu0 }
 0x29c   : > { %v2916_v18 = vadd.f32 %v2915_v13, %v2914_v51  ;;  %v1900_v12 = vpack.c.bf16 %v1871_v36, %v1870_v53  ;;  %v4007_v16 = vpop.f32.mrf.mxu1  ;;  %v1840_v15 = vadd.f32 %v3971_v41, %v1626_v38 }
 0x29d   : > { %v2917_v33 = vpop.f32.mrf.mxu0 }
 0x29e   : > { %v1629_v22 = vadd.f32 %v2916_v18, %v2804_v17  ;;  %3113 = vmatprep.mubr.bf16.mxu1 %v1900_v12  ;;  %v4010_v35 = vpop.f32.mrf.mxu1  ;;  %v1872_v25 = vmax.f32 %v1840_v15, 0.0  ;;  %v2822_v18 = vadd.f32 %v3993_v1, %v3991_v55 }
 0x29f   : > { %v2918_v14 = vpop.f32.mrf.mxu0 }
 0x2a0   : > { %v1841_v19 = vadd.f32 %v3971_v41, %v1629_v22  ;;  %v2919_v6 = vadd.f32 %v2918_v14, %v2917_v33  ;;  %v4015_v29 = vpop.f32.mrf.mxu1 }
 0x2a1   : > { %v2920_v23 = vpop.f32.mrf.mxu0 }
 0x2a2   : > { %v1873_v4 = vmax.f32 %v1841_v19, 0.0  ;;  %v1634_v9 = vadd.f32 %v2919_v6, %v2807_v28  ;;  %v4017_v54 = vpop.f32.mrf.mxu1  ;;  %v2825_v6 = vadd.f32 %v4001_v31, %v3996_v10 }
 0x2a3   : > { %v2921_v58 = vpop.f32.mrf.mxu0 }
 0x2a4   : > { %v2922_v20 = vadd.f32 %v2921_v58, %v2920_v23  ;;  %v1901_v62 = vpack.c.bf16 %v1873_v4, %v1872_v25  ;;  %v4021_v0 = vpop.f32.mrf.mxu1  ;;  %v1842_v27 = vadd.f32 %v3971_v41, %v1634_v9 }
 0x2a5   : > { %v2923_v21 = vpop.f32.mrf.mxu0 }
 0x2a6   : > { %v1637_v37 = vadd.f32 %v2922_v20, %v2810_v60  ;;  %3114 = vmatmul.mubr.bf16.gmra.mxu1 %v1901_v62  ;;  %v4024_v46 = vpop.f32.mrf.mxu1  ;;  %v1874_v32 = vmax.f32 %v1842_v27, 0.0  ;;  %v2828_v20 = vadd.f32 %v4007_v16, %v4003_v39 }
 0x2a7   : > { %v2924_v44 = vpop.f32.mrf.mxu0 }
 0x2a8   : > { %v1843_v48 = vadd.f32 %v3971_v41, %v1637_v37  ;;  %v2925_v3 = vadd.f32 %v2924_v44, %v2923_v21  ;;  %v4029_v7 = vpop.f32.mrf.mxu1 }
 0x2a9   : > { %v2926_v40 = vpop.f32.mrf.mxu0 }
 0x2aa   : > { %v1875_v5 = vmax.f32 %v1843_v48, 0.0  ;;  %v1642_v8 = vadd.f32 %v2925_v3, %v2813_v50  ;;  %v4031_v59 = vpop.f32.mrf.mxu1  ;;  %v2831_v3 = vadd.f32 %v4015_v29, %v4010_v35 }
 0x2ab   : > { %v2927_v61 = vpop.f32.mrf.mxu0 }
 0x2ac   : > { %v2928_v63 = vadd.f32 %v2927_v61, %v2926_v40  ;;  %v1902_v43 = vpack.c.bf16 %v1875_v5, %v1874_v32  ;;  %v4035_v47 = vpop.f32.mrf.mxu1  ;;  %v1844_v34 = vadd.f32 %v3971_v41, %v1642_v8 }
 0x2ad   : > { %v2929_v49 = vpop.f32.mrf.mxu0 }
 0x2ae   : > { %v1645_v2 = vadd.f32 %v2928_v63, %v2816_v57  ;;  %3117 = vmatprep.mubr.bf16.mxu1 %v1902_v43  ;;  %v4038_v11 = vpop.f32.mrf.mxu1  ;;  %v1876_v56 = vmax.f32 %v1844_v34, 0.0  ;;  %v2834_v57 = vadd.f32 %v4021_v0, %v4017_v54 }
 0x2af   : > { %v2930_v45 = vpop.f32.mrf.mxu0 }
 0x2b0   : > { %v1845_v26 = vadd.f32 %v3971_v41, %v1645_v2  ;;  %v2931_v51 = vadd.f32 %v2930_v45, %v2929_v49  ;;  %v4043_v53 = vpop.f32.mrf.mxu1 }
 0x2b1   : > { %v2932_v24 = vpop.f32.mrf.mxu0 }
 0x2b2   : > { %v1877_v36 = vmax.f32 %v1845_v26, 0.0  ;;  %v1650_v38 = vadd.f32 %v2931_v51, %v2819_v30  ;;  %v4045_v13 = vpop.f32.mrf.mxu1  ;;  %v2837_v26 = vadd.f32 %v4029_v7, %v4024_v46  ;;  %v2843_v7 = vadd.f32 %v4043_v53, %v4038_v11 }
 0x2b3   : > { %v2933_v17 = vpop.f32.mrf.mxu0 }
 0x2b4   : > { %v2934_v12 = vadd.f32 %v2933_v17, %v2932_v24  ;;  %v1903_v33 = vpack.c.bf16 %v1877_v36, %v1876_v56  ;;  %v4049_v15 = vpop.f32.mrf.mxu1  ;;  %v1846_v42 = vadd.f32 %v3971_v41, %v1650_v38  ;;  %v2840_v38 = vadd.f32 %v4035_v47, %v4031_v59 }
 0x2b5   : > { %v2935_v22 = vpop.f32.mrf.mxu0 }
 0x2b6   : > { %v1653_v52 = vadd.f32 %v2934_v12, %v2822_v18  ;;  %3118 = vmatmul.mubr.bf16.gmra.mxu1 %v1903_v33  ;;  %v4052_v14 = vpop.f32.mrf.mxu1  ;;  %v1878_v1 = vmax.f32 %v1846_v42, 0.0 }
 0x2b7   : > { %v2936_v19 = vpop.f32.mrf.mxu0 }
 0x2b8   : > { %v1847_v28 = vadd.f32 %v3971_v41, %v1653_v52  ;;  %v2937_v23 = vadd.f32 %v2936_v19, %v2935_v22  ;;  %v4057_v25 = vpop.f32.mrf.mxu1 }
 0x2b9   : > { %v2938_v55 = vpop.f32.mrf.mxu0  ;;  %v2849_v53 = vadd.f32 %v4057_v25, %v4052_v14 }
 0x2ba   : > { %v1879_v4 = vmax.f32 %v1847_v28, 0.0  ;;  %v1658_v9 = vadd.f32 %v2937_v23, %v2825_v6  ;;  %v4059_v58 = vpop.f32.mrf.mxu1 }
 0x2bb   : > { %v2939_v60 = vpop.f32.mrf.mxu0 }
 0x2bc   : > { %v2940_v62 = vadd.f32 %v2939_v60, %v2938_v55  ;;  %v1904_v21 = vpack.c.bf16 %v1879_v4, %v1878_v1  ;;  %v4063_v27 = vpop.f32.mrf.mxu1  ;;  %v1848_v10 = vadd.f32 %v3971_v41, %v1658_v9  ;;  %v2846_v1 = vadd.f32 %v4049_v15, %v4045_v13 }
 0x2bd   : > { %v2941_v37 = vpop.f32.mrf.mxu0 }
 0x2be   : > { %v1661_v31 = vadd.f32 %v2940_v62, %v2828_v20  ;;  %3121 = vmatprep.mubr.bf16.mxu1 %v1904_v21  ;;  %v4066_v44 = vpop.f32.mrf.mxu1  ;;  %v1880_v16 = vmax.f32 %v1848_v10, 0.0 }
 0x2bf   : > { %v2942_v48 = vpop.f32.mrf.mxu0 }
 0x2c0   : > { %v1849_v50 = vadd.f32 %v3971_v41, %v1661_v31  ;;  %v2943_v40 = vadd.f32 %v2942_v48, %v2941_v37  ;;  %v4071_v39 = vpop.f32.mrf.mxu1 }
 0x2c1   : > { %v2944_v32 = vpop.f32.mrf.mxu0  ;;  %v2855_v25 = vadd.f32 %v4071_v39, %v4066_v44 }
 0x2c2   : > { %v1881_v5 = vmax.f32 %v1849_v50, 0.0  ;;  %v1666_v8 = vadd.f32 %v2943_v40, %v2831_v3  ;;  %v4075_v34 = vpop.f32.mrf.mxu1  ;;  %v2852_v40 = vadd.f32 %v4063_v27, %v4059_v58 }
 0x2c3   : > { %v2945_v61 = vpop.f32.mrf.mxu0 }
 0x2c4   : > { %v2946_v63 = vadd.f32 %v2945_v61, %v2944_v32  ;;  %v1905_v43 = vpack.c.bf16 %v1881_v5, %v1880_v16  ;;  %v1850_v2 = vadd.f32 %v3971_v41, %v1666_v8  ;;  %v2857_v24 = vpop.f32.mrf.mxu1 }
 0x2c5   : > { %v2947_v49 = vpop.f32.mrf.mxu0 }
 0x2c6   : > { %v1669_v45 = vadd.f32 %v2946_v63, %v2834_v57  ;;  %3122 = vmatmul.mubr.bf16.gmra.mxu1 %v1905_v43  ;;  %v1882_v56 = vmax.f32 %v1850_v2, 0.0  ;;  %v2859_v33 = vpop.f32.mrf.mxu1 }
 0x2c7   : > { %v2948_v35 = vpop.f32.mrf.mxu0 }
 0x2c8   : > { %v1851_v29 = vadd.f32 %v3971_v41, %v1669_v45  ;;  %v2949_v30 = vadd.f32 %v2948_v35, %v2947_v49  ;;  %v2860_v6 = vpop.f32.mrf.mxu1 }
 0x2c9   : > { %v2950_v51 = vpop.f32.mrf.mxu0  ;;  %v2861_v39 = vadd.f32 %v2860_v6, %v2859_v33 }
 0x2ca   : > { %v1883_v54 = vmax.f32 %v1851_v29, 0.0  ;;  %v1674_v0 = vadd.f32 %v2949_v30, %v2837_v26  ;;  %v2862_v20 = vpop.f32.mrf.mxu1  ;;  %v2858_v29 = vadd.f32 %v2857_v24, %v4075_v34 }
 0x2cb   : > { %v2951_v36 = vpop.f32.mrf.mxu0 }
 0x2cc   : > { %v2952_v17 = vadd.f32 %v2951_v36, %v2950_v51  ;;  %v1906_v18 = vpack.c.bf16 %v1883_v54, %v1882_v56  ;;  %v1852_v22 = vadd.f32 %v3971_v41, %v1674_v0  ;;  %v2863_v48 = vpop.f32.mrf.mxu1 }
 0x2cd   : > { %v2953_v12 = vpop.f32.mrf.mxu0  ;;  %v2864_v34 = vadd.f32 %v2863_v48, %v2862_v20 }
 0x2ce   : > { %v1677_v42 = vadd.f32 %v2952_v17, %v2840_v38  ;;  %3125 = vmatprep.mubr.bf16.mxu1 %v1906_v18  ;;  %v1884_v23 = vmax.f32 %v1852_v22, 0.0  ;;  %v2865_v8 = vpop.f32.mrf.mxu1 }
 0x2cf   : > { %v2954_v52 = vpop.f32.mrf.mxu0 }
 0x2d0   : > { %v1853_v46 = vadd.f32 %v3971_v41, %v1677_v42  ;;  %v2955_v19 = vadd.f32 %v2954_v52, %v2953_v12  ;;  %v2866_v2 = vpop.f32.mrf.mxu1 }
 0x2d1   : > { %v2956_v28 = vpop.f32.mrf.mxu0  ;;  %v2867_v33 = vadd.f32 %v2866_v2, %v2865_v8 }
 0x2d2   : > { %v1885_v55 = vmax.f32 %v1853_v46, 0.0  ;;  %v1682_v59 = vadd.f32 %v2955_v19, %v2843_v7  ;;  %v2868_v56 = vpop.f32.mrf.mxu1 }
 0x2d3   : > { %v2957_v47 = vpop.f32.mrf.mxu0 }
 0x2d4   : > { %v2958_v4 = vadd.f32 %v2957_v47, %v2956_v28  ;;  %v1907_v9 = vpack.c.bf16 %v1885_v55, %v1884_v23  ;;  %v1854_v62 = vadd.f32 %v3971_v41, %v1682_v59  ;;  %v2869_v18 = vpop.f32.mrf.mxu1 }
 0x2d5   : > { %v2959_v60 = vpop.f32.mrf.mxu0  ;;  %v2870_v20 = vadd.f32 %v2869_v18, %v2868_v56 }
 0x2d6   : > { %v1685_v21 = vadd.f32 %v2958_v4, %v2846_v1  ;;  %3126 = vmatmul.mubr.bf16.gmra.mxu1 %v1907_v9  ;;  %v1886_v50 = vmax.f32 %v1854_v62, 0.0  ;;  %v2871_v19 = vpop.f32.mrf.mxu1 }
 0x2d7   : > { %v2960_v37 = vpop.f32.mrf.mxu0 }
 0x2d8   : > { %v1855_v11 = vadd.f32 %v3971_v41, %v1685_v21  ;;  %v2961_v10 = vadd.f32 %v2960_v37, %v2959_v60  ;;  %v2872_v1 = vpop.f32.mrf.mxu1 }
 0x2d9   : > { %v2962_v31 = vpop.f32.mrf.mxu0 }
 0x2da   : > { %v1887_v3 = vmax.f32 %v1855_v11, 0.0  ;;  %v1690_v13 = vadd.f32 %v2961_v10, %v2849_v53  ;;  %v2874_v53 = vpop.f32.mrf.mxu1 }
 0x2db   : > { %v2963_v15 = vpop.f32.mrf.mxu0 }
 0x2dc   : > { %v2964_v32 = vadd.f32 %v2963_v15, %v2962_v31  ;;  %v1908_v16 = vpack.c.bf16 %v1887_v3, %v1886_v50  ;;  %v1856_v61 = vadd.f32 %v3971_v41, %v1690_v13  ;;  %v2873_v3 = vadd.f32 %v2872_v1, %v2871_v19 }
 0x2dd   : > { %v2965_v5 = vpop.f32.mrf.mxu0 }
 0x2de   : > { %v1693_v57 = vadd.f32 %v2964_v32, %v2852_v40  ;;  %3129 = vmatprep.mubr.bf16.mxu1 %v1908_v16  ;;  %v1888_v45 = vmax.f32 %v1856_v61, 0.0  ;;  %v2875_v40 = vpop.f32.mrf.mxu1 }
 0x2df   : > { %v2966_v63 = vpop.f32.mrf.mxu0  ;;  %v2876_v61 = vadd.f32 %v2875_v40, %v2874_v53 }
 0x2e0   : > { %v1857_v14 = vadd.f32 %v3971_v41, %v1693_v57  ;;  %v2967_v43 = vadd.f32 %v2966_v63, %v2965_v5 }
 0x2e1   : > { %v2968_v49 = vpop.f32.mrf.mxu0 }
 0x2e2   : > { %v1889_v35 = vmax.f32 %v1857_v14, 0.0  ;;  %v1698_v58 = vadd.f32 %v2967_v43, %v2855_v25 }
 0x2e3   : > { %v2969_v27 = vpop.f32.mrf.mxu0 }
 0x2e4   : > { %v2970_v26 = vadd.f32 %v2969_v27, %v2968_v49  ;;  %v1909_v30 = vpack.c.bf16 %v1889_v35, %v1888_v45  ;;  %v1858_v54 = vadd.f32 %v3971_v41, %v1698_v58 }
 0x2e5   : > { %v2971_v51 = vpop.f32.mrf.mxu0 }
 0x2e6   : > { %v1701_v0 = vadd.f32 %v2970_v26, %v2858_v29  ;;  %3130 = vmatmul.mubr.bf16.gmra.mxu1 %v1909_v30  ;;  %v1890_v12 = vmax.f32 %v1858_v54, 0.0 }
 0x2e7   : > { %v2972_v36 = vpop.f32.mrf.mxu0 }
 0x2e8   : > { %v1859_v44 = vadd.f32 %v3971_v41, %v1701_v0  ;;  %v2973_v38 = vadd.f32 %v2972_v36, %v2971_v51 }
 0x2e9   : > { %v2974_v17 = vpop.f32.mrf.mxu0 }
 0x2ea   : > { %v1891_v22 = vmax.f32 %v1859_v44, 0.0  ;;  %v1706_v42 = vadd.f32 %v2973_v38, %v2861_v39 }
 0x2eb   : > { %v2975_v52 = vpop.f32.mrf.mxu0 }
 0x2ec   : > { %v2976_v24 = vadd.f32 %v2975_v52, %v2974_v17  ;;  %v1910_v46 = vpack.c.bf16 %v1891_v22, %v1890_v12  ;;  %v1860_v28 = vadd.f32 %v3971_v41, %v1706_v42 }
 0x2ed   : > { %v2977_v7 = vpop.f32.mrf.mxu0 }
 0x2ee   : > { %v1709_v23 = vadd.f32 %v2976_v24, %v2864_v34  ;;  %3133 = vmatprep.mubr.bf16.mxu1 %v1910_v46  ;;  %v1892_v4 = vmax.f32 %v1860_v28, 0.0 }
 0x2ef   : > { %v2978_v55 = vpop.f32.mrf.mxu0 }
 0x2f0   : > { %v1861_v59 = vadd.f32 %v3971_v41, %v1709_v23  ;;  %v2979_v6 = vadd.f32 %v2978_v55, %v2977_v7 }
 0x2f1   : > { %v2980_v47 = vpop.f32.mrf.mxu0 }
 0x2f2   : > { %v1893_v9 = vmax.f32 %v1861_v59, 0.0  ;;  %v1714_v60 = vadd.f32 %v2979_v6, %v2867_v33 }
 0x2f3   : > { %v2981_v62 = vpop.f32.mrf.mxu0 }
 0x2f4   : > { %v2982_v21 = vadd.f32 %v2981_v62, %v2980_v47  ;;  %v1911_v37 = vpack.c.bf16 %v1893_v9, %v1892_v4  ;;  %v1862_v10 = vadd.f32 %v3971_v41, %v1714_v60 }
 0x2f5   : > { %v2983_v11 = vpop.f32.mrf.mxu0 }
 0x2f6   : > { %v1717_v31 = vadd.f32 %v2982_v21, %v2870_v20  ;;  %3134 = vmatmul.mubr.bf16.gmra.mxu1 %v1911_v37  ;;  %v1894_v32 = vmax.f32 %v1862_v10, 0.0 }
 0x2f7   : > { %v2984_v48 = vpop.f32.mrf.mxu0 }
 0x2f8   : > { %v1863_v50 = vadd.f32 %v3971_v41, %v1717_v31  ;;  %v2985_v13 = vadd.f32 %v2984_v48, %v2983_v11 }
 0x2f9   : > { %v2986_v15 = vpop.f32.mrf.mxu0 }
 0x2fa   : > { %v1895_v16 = vmax.f32 %v1863_v50, 0.0  ;;  %v1722_v5 = vadd.f32 %v2985_v13, %v2873_v3 }
 0x2fb   : > { %v2987_v8 = vpop.f32.mrf.mxu0 }
 0x2fc   : > { %v2988_v57 = vadd.f32 %v2987_v8, %v2986_v15  ;;  %v1912_v63 = vpack.c.bf16 %v1895_v16, %v1894_v32  ;;  %v1864_v14 = vadd.f32 %v3971_v41, %v1722_v5 }
 0x2fe   : > { %v1725_v25 = vadd.f32 %v2988_v57, %v2876_v61  ;;  %3137 = vmatprep.mubr.bf16.mxu1 %v1912_v63  ;;  %v1896_v49 = vmax.f32 %v1864_v14, 0.0 }
 0x300   : > { %v1865_v43 = vadd.f32 %v3971_v41, %v1725_v25 }
 0x302   : > { %v1897_v2 = vmax.f32 %v1865_v43, 0.0 }
 0x304   : > { %v1913_v45 = vpack.c.bf16 %v1897_v2, %v1896_v49 }
 0x306   : > { %3138 = vmatmul.mubr.bf16.gmra.mxu1 %v1913_v45 }
 0x356   : > { %v3111_v35 = vpop.f32.mrf.mxu1 }
 0x358   : > { %v2012_v58 = vpop.f32.mrf.mxu1 }
 0x35a   : > { %v3112_v27 = vpop.f32.mrf.mxu1 }
 0x35b   : > { %v2638_v29 = vpack.c.bf16 %v3112_v27, %v3111_v35 }
 0x35c   : > { %v2015_v26 = vpop.f32.mrf.mxu1 }
 0x35d   : > { %2710 = vst [vmem:[%s4109_s27 + $0x8] sm:$0xff] %v2638_v29   ;;  %v2633_v30 = vpack.c.bf16 %v2015_v26, %v2012_v58 }
 0x35f   : > { %2634 = vst [vmem:[%s4109_s27] sm:$0xff] %v2633_v30  }
 0x366   : > { %v3115_v41 = vpop.f32.mrf.mxu1 }
 0x368   : > { %v2028_v51 = vpop.f32.mrf.mxu1 }
 0x36a   : > { %v3116_v56 = vpop.f32.mrf.mxu1 }
 0x36b   : > { %v2648_v54 = vpack.c.bf16 %v3116_v56, %v3115_v41 }
 0x36c   : > { %v2031_v0 = vpop.f32.mrf.mxu1 }
 0x36d   : > { %2712 = vst [vmem:[%s4109_s27 + $0x18] sm:$0xff] %v2648_v54   ;;  %v2643_v36 = vpack.c.bf16 %v2031_v0, %v2028_v51 }
 0x36f   : > { %2711 = vst [vmem:[%s4109_s27 + $0x10] sm:$0xff] %v2643_v36  }
 0x376   : > { %v3119_v44 = vpop.f32.mrf.mxu1 }
 0x378   : > { %v2044_v39 = vpop.f32.mrf.mxu1 }
 0x37a   : > { %v3120_v38 = vpop.f32.mrf.mxu1 }
 0x37b   : > { %v2658_v17 = vpack.c.bf16 %v3120_v38, %v3119_v44 }
 0x37c   : > { %v2047_v18 = vpop.f32.mrf.mxu1 }
 0x37d   : > { %2714 = vst [vmem:[%s4109_s27 + $0x28] sm:$0xff] %v2658_v17   ;;  %v2653_v12 = vpack.c.bf16 %v2047_v18, %v2044_v39 }
 0x37f   : > { %2713 = vst [vmem:[%s4109_s27 + $0x20] sm:$0xff] %v2653_v12  }
 0x386   : > { %v3123_v22 = vpop.f32.mrf.mxu1 }
 0x388   : > { %v2060_v42 = vpop.f32.mrf.mxu1 }
 0x38a   : > { %v3124_v52 = vpop.f32.mrf.mxu1 }
 0x38b   : > { %v2668_v34 = vpack.c.bf16 %v3124_v52, %v3123_v22 }
 0x38c   : > { %v2063_v24 = vpop.f32.mrf.mxu1 }
 0x38d   : > { %2716 = vst [vmem:[%s4109_s27 + $0x38] sm:$0xff] %v2668_v34   ;;  %v2663_v46 = vpack.c.bf16 %v2063_v24, %v2060_v42 }
 0x38f   : > { %2715 = vst [vmem:[%s4109_s27 + $0x30] sm:$0xff] %v2663_v46  }
 0x396   : > { %v3127_v7 = vpop.f32.mrf.mxu1 }
 0x398   : > { %v2076_v19 = vpop.f32.mrf.mxu1 }
 0x39a   : > { %v3128_v28 = vpop.f32.mrf.mxu1 }
 0x39b   : > { %v2678_v23 = vpack.c.bf16 %v3128_v28, %v3127_v7 }
 0x39c   : > { %v2079_v55 = vpop.f32.mrf.mxu1 }
 0x39d   : > { %2718 = vst [vmem:[%s4109_s27 + $0x48] sm:$0xff] %v2678_v23   ;;  %v2673_v59 = vpack.c.bf16 %v2079_v55, %v2076_v19 }
 0x39f   : > { %2717 = vst [vmem:[%s4109_s27 + $0x40] sm:$0xff] %v2673_v59  }
 0x3a6   : > { %v3131_v33 = vpop.f32.mrf.mxu1 }
 0x3a8   : > { %v2092_v6 = vpop.f32.mrf.mxu1 }
 0x3aa   : > { %v3132_v47 = vpop.f32.mrf.mxu1 }
 0x3ab   : > { %v2688_v1 = vpack.c.bf16 %v3132_v47, %v3131_v33 }
 0x3ac   : > { %v2095_v4 = vpop.f32.mrf.mxu1 }
 0x3ad   : > { %2720 = vst [vmem:[%s4109_s27 + $0x58] sm:$0xff] %v2688_v1   ;;  %v2683_v9 = vpack.c.bf16 %v2095_v4, %v2092_v6 }
 0x3af   : > { %2719 = vst [vmem:[%s4109_s27 + $0x50] sm:$0xff] %v2683_v9  }
 0x3b6   : > { %v3135_v60 = vpop.f32.mrf.mxu1 }
 0x3b8   : > { %v2108_v62 = vpop.f32.mrf.mxu1 }
 0x3ba   : > { %v3136_v20 = vpop.f32.mrf.mxu1 }
 0x3bb   : > { %v2698_v21 = vpack.c.bf16 %v3136_v20, %v3135_v60 }
 0x3bc   : > { %v2111_v37 = vpop.f32.mrf.mxu1 }
 0x3bd   : > { %2722 = vst [vmem:[%s4109_s27 + $0x68] sm:$0xff] %v2698_v21   ;;  %v2693_v11 = vpack.c.bf16 %v2111_v37, %v2108_v62 }
 0x3bf   : > { %2721 = vst [vmem:[%s4109_s27 + $0x60] sm:$0xff] %v2693_v11  }
 0x3c6   : > { %v3139_v53 = vpop.f32.mrf.mxu1 }
 0x3c8   : > { %v2124_v10 = vpop.f32.mrf.mxu1 }
 0x3ca   : > { %v3140_v31 = vpop.f32.mrf.mxu1 }
 0x3cb   : > { %v2708_v48 = vpack.c.bf16 %v3140_v31, %v3139_v53 }
 0x3cc   : > { %v2127_v50 = vpop.f32.mrf.mxu1 }
 0x3cd   : > { %2724 = vst [vmem:[%s4109_s27 + $0x78] sm:$0xff] %v2708_v48   ;;  %v2703_v3 = vpack.c.bf16 %v2127_v50, %v2124_v10 }
 0x3cf   : > { %2723 = vst [vmem:[%s4109_s27 + $0x70] sm:$0xff] %v2703_v3  }
 0x3d0   : > { %3519 = shalt.err (!%p3516_p13)
}
 0x3d1   : > { %s3520_s1 = scalar_lea.hbm %s4130_s10, 2048  ;;  %s3524_s28 = scalar_lea.hbm %s4187_s5, 4096 }
 0x3d2   : > { %p3521_p1 = scmp.ne.s32.totalorder %s4130_s10, %s3520_s1  ;;  %p3525_p12 = scmp.lt.s32.totalorder %s4130_s10, %s4187_s5 }
 0x3d3   : > { %p3526_p5 = scmp.lt.s32.totalorder %s3524_s28, %s3520_s1 }
 0x3d4   : > { %p3522_p4 = pnand %p3521_p1, %p3737_p0 }
 0x3d5   : > { %p3527_p3 = por %p3526_p5, %p3525_p12 }
 0x3d6   : > { %p3523_p8 = pneg %p3522_p4 }
 0x3d8   : > { %p3528_p10 = pnand %p3527_p3, %p3523_p8 }
 0x3da   : > { %3531 = shalt.err (!%p3528_p10)
}
 0x3db   : > { %s3605_s7 = smov 64   ;;  %s3606_s11 = smov 4  }
 0x3dc   : > { %3171 = dma.vmem_to_hbm [thread:$0]  (%p3737_p0), %s4132_s9, 2048, %s4130_s10, %s2300_s14, %s3605_s7, %s3605_s7, %s3606_s11  }
 0x3dd PF: > { %s2328_s17 = sand.u32 1, %s3574_s18   ;;  %p4206_p2 = scmp.ne.s32.totalorder %s4196_s29, 0 }
 0x3de   : > { %p4207_p11 = scmp.ge.s32.totalorder %s3594_s23, 2  ;;  %s2329_s12 = scalar_lea.sflag [#allocation5], %s2328_s17 }
 0x3e0   : > { %p3188_p7 = pnand %p4207_p11, %p4206_p2 }
 0x3e2   : > { %p3189_p6 = pneg %p3188_p7 }
 0x3e4   : > { %3569 = dma.done.wait (%p3189_p6), %s2329_s12, 2048  }
 0x3e5   : > { %3571 = vsyncadd (%p3189_p6), %s2329_s12, 4294965248  ;;  %s23_s23 = sadd.s32 1, %s3594_s23   ;;  %s4208_s18 = smov %s3578_s19 }
 0x3e6   : > { %p20_p9 = scmp.ge.s32.totalorder %s23_s23, 4   ;;  %s4209_s19 = smov %s3582_s20 }
 0x3e7   : > { %s4210_s20 = smov %s3749_s15  ;;  %s4211_s21 = smov %s3590_s22 }
 0x3e8   : > { %s4212_s22 = smov %s4214_s13  ;;  %22 = sbr.rel (!%p20_p9) target bundleno = 10 (0xa), region = 106 }
 0x3ed   :  { %2334 = vsyncpa [#allocation4], 1 }
 0x3ee   :  { %2336 = vsyncpa [#allocation4 + $0x1], 1 }
 0x3ef   :  { %2337 = vsyncpa [#allocation7], 1 }
 0x3f0   :  { %2338 = vsyncpa [#allocation10], 1 }
 0x3f1   :  { %2339 = vsyncpa [#allocation5], 1 }
 0x3f2   :  { %2341 = vsyncpa [#allocation5 + $0x1], 1 }

</bundles_post_ra>
